<compile_context>
chip_gen: v5e
topology: v5e:2x2
jax: 0.10.0
libtpu: 0.0.40
codegen_flags: <defaults>
</compile_context>

<pallas_src>
import functools
import math

import jax
import jax.numpy as jnp
from jax import lax
from jax.experimental import pallas as pl
from jax.experimental.pallas import tpu as pltpu


_MATRIX_PARAMS = ("Wq", "Wk", "Wv", "Wo", "W1", "W2")
_VECTOR_PARAMS = ("bq", "bk", "bv", "bo", "bf1", "bf2",
                  "g1", "b1", "g2", "b2", "gn", "bn")


# ----------------------------------------------------------------------------
# Fused kernel: one grid step == one (batch, Sq-tile); whole L-layer stack.
# ----------------------------------------------------------------------------

def _fused_stack_kernel(*refs, num_layers, nheads, scale, eps,
                        has_pos_q, has_mask_q, mxu_dtype):
    it = iter(refs)
    q_ref = next(it)          # (1, tq, D)
    k_ref = next(it)          # (1, Sk, D)   (pos_k already added in wrapper)
    v_ref = next(it)          # (1, Sk, D)
    bias_ref = next(it)       # (1, tq, Sk)  (mask_k already folded in wrapper)
    pos_q_ref = next(it) if has_pos_q else None
    keep_ref = next(it) if has_mask_q else None
    (Wq, Wk, Wv, Wo, W1, W2) = (next(it) for _ in range(6))
    (bq, bk, bv, bo, bf1, bf2,
     g1, b1, g2, b2, gn, bn) = (next(it) for _ in range(12))
    o_ref = next(it)          # (1, tq, D)

    f32 = jnp.float32
    x0 = q_ref[0].astype(f32)                    # (tq, D)
    kk = k_ref[0]                                # (Sk, D)
    vv = v_ref[0]                                # (Sk, D)
    bias = bias_ref[0].astype(f32)               # (tq, Sk) shared by all heads
    tq, D = x0.shape
    Dh = D // nheads

    def mm(a, w):
        # MXU matmul: operands in mxu_dtype (bf16 in production), f32 accumulate.
        return jnp.dot(a.astype(mxu_dtype), w.astype(mxu_dtype),
                       preferred_element_type=f32)

    def layer_norm(y, g, b):
        mean = jnp.mean(y, axis=-1, keepdims=True)
        var = jnp.mean((y - mean) ** 2, axis=-1, keepdims=True)
        return (y - mean) * lax.rsqrt(var + eps) * g + b

    # Read weights once (VMEM-resident); biases / LN params kept f32.
    Wq_v, Wk_v, Wv_v, Wo_v, W1_v, W2_v = (w[...] for w in (Wq, Wk, Wv, Wo, W1, W2))
    bq_v, bk_v, bv_v, bo_v, bf1_v, bf2_v = (
        b[...].astype(f32) for b in (bq, bk, bv, bo, bf1, bf2))
    g1_v, b1_v, g2_v, b2_v, gn_v, bn_v = (
        p[...].astype(f32) for p in (g1, b1, g2, b2, gn, bn))

    # Loop-invariant work hoisted out of the layer loop.
    k2 = mm(kk, Wk_v) + bk_v                     # (Sk, D) f32
    v2 = mm(vv, Wv_v) + bv_v                     # (Sk, D) f32
    pos_q = pos_q_ref[0].astype(f32) if has_pos_q else None
    keep_b = (jnp.broadcast_to(keep_ref[0].astype(f32), (tq, D))
              if has_mask_q else None)           # broadcast hoisted (done once)

    def layer_body(_, x):
        q_in = x if pos_q is None else x + pos_q
        # 1/sqrt(Dh) folded into q2: O(tq*D) instead of O(H*tq*Sk) per layer.
        q2 = (mm(q_in, Wq_v) + bq_v) * scale     # (tq, D) f32

        # Per-head attention; heads accumulate straight into the Wo projection
        # (attn @ Wo == sum_h ctx_h @ Wo[h*Dh:(h+1)*Dh]) -> no lane-axis concat.
        attn_o = None
        for h in range(nheads):                  # static head loop
            lo = h * Dh
            qh = q2[:, lo:lo + Dh]               # (tq, Dh) static lane slice
            kh = k2[:, lo:lo + Dh]               # (Sk, Dh)
            vh = v2[:, lo:lo + Dh]               # (Sk, Dh)
            # QK^T without materializing a transpose of K.
            sc = lax.dot_general(
                qh.astype(mxu_dtype), kh.astype(mxu_dtype),
                (((1,), (1,)), ((), ())),
                preferred_element_type=f32) + bias           # (tq, Sk) f32
            m = jnp.max(sc, axis=-1, keepdims=True)
            p = jnp.exp(sc - m)
            l = jnp.sum(p, axis=-1, keepdims=True)
            # EUP approx reciprocal + one Newton step (keeps f32-path tolerance).
            inv = pl.reciprocal(l, approx=True)
            inv = inv * (2.0 - l * inv)
            ctx = mm(p, vh) * inv                # normalize AFTER PV: O(tq*Dh)
            part = mm(ctx, Wo_v[lo:lo + Dh, :])  # (tq, D)
            attn_o = part if attn_o is None else attn_o + part
        attn_o = attn_o + bo_v
        if keep_b is not None:
            attn_o = attn_o * keep_b             # zero masked queries

        y = layer_norm(x + attn_o, g1_v, b1_v)
        ff = jnp.maximum(mm(y, W1_v) + bf1_v, 0.0)
        ff = mm(ff, W2_v) + bf2_v
        return layer_norm(y + ff, g2_v, b2_v)

    # fori_loop (not static unroll) bounds live ranges / code size with L.
    x = lax.fori_loop(0, num_layers, layer_body, x0)

    # Final module-level norm (self.norm) fused as well.
    # TODO(synk): at D not a multiple of 128 this store is a masked vst; pad D
    #             to 128 for production shapes to get lane-dense stores.
    o_ref[0] = layer_norm(x, gn_v, bn_v).astype(o_ref.dtype)


# ----------------------------------------------------------------------------
# Wrapper: loop-invariant preprocessing + single pallas_call for the stack
# ----------------------------------------------------------------------------

def attention_module_forward(params, q, k, v, s, pos_q=None, pos_k=None,
                             mask_q=None, mask_k=None, *, num_layers, nheads,
                             eps=1e-5, mxu_dtype=jnp.bfloat16, q_block=256,
                             vmem_limit_bytes=64 * 1024 * 1024):
    Sq, B, D = q.shape
    Sk = k.shape[0]
    assert D % nheads == 0
    Dh = D // nheads

    # Sq tile: every query row is independent through the whole stack, so the
    # grid tiles Sq and the VMEM footprint scales with tq*Sk / tq*D (not Sq*Sk).
    tq = q_block if (Sq > q_block and Sq % q_block == 0) else Sq
    n_qt = Sq // tq

    # ---- loop-invariant preprocessing (hoisted out of the kernel) ----
    k_in = (k if pos_k is None else k + pos_k).astype(jnp.float32)    # (Sk, B, D)
    bias = s.astype(jnp.float32)                                      # (B, Sq, Sk)
    if mask_k is not None:
        bias = bias + jnp.where(mask_k[:, None, :], -1e9, 0.0).astype(jnp.float32)

    # Batch-major so the grid tiles (B, Sq).
    # TODO(synk): drop these transposes (extra HBM passes) if callers can
    #             supply batch-major tensors directly.
    qb = jnp.transpose(q, (1, 0, 2)).astype(jnp.float32)              # (B, Sq, D)
    kb = jnp.transpose(k_in, (1, 0, 2))                               # (B, Sk, D)
    vb = jnp.transpose(v, (1, 0, 2)).astype(jnp.float32)              # (B, Sk, D)

    inputs = [qb, kb, vb, bias]
    in_specs = [
        pl.BlockSpec((1, tq, D), lambda b, i: (b, i, 0)),
        pl.BlockSpec((1, Sk, D), lambda b, i: (b, 0, 0)),
        pl.BlockSpec((1, Sk, D), lambda b, i: (b, 0, 0)),
        pl.BlockSpec((1, tq, Sk), lambda b, i: (b, i, 0)),
    ]

    has_pos_q = pos_q is not None
    if has_pos_q:
        inputs.append(jnp.transpose(pos_q, (1, 0, 2)).astype(jnp.float32))
        in_specs.append(pl.BlockSpec((1, tq, D), lambda b, i: (b, i, 0)))

    has_mask_q = mask_q is not None
    if has_mask_q:
        keep_q = jnp.where(mask_q, 0.0, 1.0).astype(jnp.float32)[:, :, None]
        inputs.append(keep_q)                                          # (B, Sq, 1)
        in_specs.append(pl.BlockSpec((1, tq, 1), lambda b, i: (b, i, 0)))

    # Weight matrices in MXU dtype (bf16 in production: faster MXU + half the
    # weight VMEM); biases / LN params stay f32.  Constant block index ->
    # DMA'd once, VMEM-resident across the grid.
    # TODO(synk): single-buffer these specs (pl.Buffered(1)) to halve weight
    #             VMEM on v7x once validated.
    for name in _MATRIX_PARAMS:
        p = params[name].astype(mxu_dtype)
        inputs.append(p)
        in_specs.append(pl.BlockSpec(p.shape, lambda b, i: (0, 0)))
    for name in _VECTOR_PARAMS:
        p = params[name].astype(jnp.float32).reshape(1, -1)
        inputs.append(p)
        in_specs.append(pl.BlockSpec(p.shape, lambda b, i: (0, 0)))

    kernel = functools.partial(
        _fused_stack_kernel,
        num_layers=num_layers, nheads=nheads,
        scale=1.0 / math.sqrt(Dh), eps=eps,
        has_pos_q=has_pos_q, has_mask_q=has_mask_q, mxu_dtype=mxu_dtype)

    out_b = pl.pallas_call(
        kernel,
        out_shape=jax.ShapeDtypeStruct((B, Sq, D), q.dtype),
        grid=(B, n_qt),
        in_specs=in_specs,
        out_specs=pl.BlockSpec((1, tq, D), lambda b, i: (b, i, 0)),
        compiler_params=pltpu.CompilerParams(
            dimension_semantics=("parallel", "parallel"),
            vmem_limit_bytes=vmem_limit_bytes),
    )(*inputs)

    out = jnp.transpose(out_b, (1, 0, 2))       # back to (Sq, B, D)
    return out[None]                            # unsqueeze(0)


# ----------------------------------------------------------------------------
# Pure-JAX reference (same math) for correctness checking
# ----------------------------------------------------------------------------

def _ref_layernorm(x, g, b, eps=1e-5):
    m = jnp.mean(x, axis=-1, keepdims=True)
    var = jnp.mean((x - m) ** 2, axis=-1, keepdims=True)
    return (x - m) * lax.rsqrt(var + eps) * g + b


def _ref_layer(p, q_out, k, v, s, pos_q, pos_k, mask_q, mask_k, nheads):
    Sq, B, D = q_out.shape
    Sk = k.shape[0]
    Dh = D // nheads
    q_in = q_out if pos_q is None else q_out + pos_q
    k_in = k if pos_k is None else k + pos_k
    q2 = q_in @ p["Wq"] + p["bq"]
    k2 = k_in @ p["Wk"] + p["bk"]
    v2 = v @ p["Wv"] + p["bv"]
    qh = q2.reshape(Sq, B, nheads, Dh).transpose(1, 2, 0, 3)
    kh = k2.reshape(Sk, B, nheads, Dh).transpose(1, 2, 0, 3)
    vh = v2.reshape(Sk, B, nheads, Dh).transpose(1, 2, 0, 3)
    logits = jnp.einsum("bhqd,bhkd->bhqk", qh, kh) / math.sqrt(Dh)
    bias = s
    if mask_k is not None:
        bias = bias + jnp.where(mask_k[:, None, :], -1e9, 0.0)
    logits = logits + bias[:, None, :, :]
    pa = jax.nn.softmax(logits, axis=-1)
    attn = jnp.einsum("bhqk,bhkd->bhqd", pa, vh).transpose(2, 0, 1, 3).reshape(Sq, B, D)
    attn_o = attn @ p["Wo"] + p["bo"]
    if mask_q is not None:
        attn_o = jnp.where(mask_q.T[:, :, None], 0.0, attn_o)
    x = _ref_layernorm(q_out + attn_o, p["g1"], p["b1"])
    ff = jax.nn.relu(x @ p["W1"] + p["bf1"]) @ p["W2"] + p["bf2"]
    return _ref_layernorm(x + ff, p["g2"], p["b2"])


def _ref_forward(p, q, k, v, s, pos_q, pos_k, mask_q, mask_k, num_layers, nheads):
    out = q
    for _ in range(num_layers):
        out = _ref_layer(p, out, k, v, s, pos_q, pos_k, mask_q, mask_k, nheads)
    return _ref_layernorm(out, p["gn"], p["bn"])[None]


# ----------------------------------------------------------------------------
# main
# ----------------------------------------------------------------------------

if __name__ == "__main__":
    Sq, Sk, B, D, H, FF, L = 8, 16, 2, 32, 4, 64, 2

    key = jax.random.PRNGKey(0)
    keys = jax.random.split(key, 16)

    def w(k_, shape, scale=0.05):
        return (scale * jax.random.normal(k_, shape)).astype(jnp.float32)

    params = {
        "Wq": w(keys[0], (D, D)), "bq": jnp.zeros((D,), jnp.float32),
        "Wk": w(keys[1], (D, D)), "bk": jnp.zeros((D,), jnp.float32),
        "Wv": w(keys[2], (D, D)), "bv": jnp.zeros((D,), jnp.float32),
        "Wo": w(keys[3], (D, D)), "bo": jnp.zeros((D,), jnp.float32),
        "W1": w(keys[4], (D, FF)), "bf1": jnp.zeros((FF,), jnp.float32),
        "W2": w(keys[5], (FF, D)), "bf2": jnp.zeros((D,), jnp.float32),
        "g1": jnp.ones((D,), jnp.float32), "b1": jnp.zeros((D,), jnp.float32),
        "g2": jnp.ones((D,), jnp.float32), "b2": jnp.zeros((D,), jnp.float32),
        "gn": jnp.ones((D,), jnp.float32), "bn": jnp.zeros((D,), jnp.float32),
    }

    q = w(keys[6], (Sq, B, D), 1.0)
    k = w(keys[7], (Sk, B, D), 1.0)
    v = w(keys[8], (Sk, B, D), 1.0)
    s = w(keys[9], (B, Sq, Sk), 0.1)
    pos_q = w(keys[10], (Sq, B, D), 0.1)
    pos_k = w(keys[11], (Sk, B, D), 0.1)

    ref = _ref_forward(params, q, k, v, s, pos_q, pos_k, None, None, L, H)

    # 1) f32 MXU path (tight tolerance), no masks.
    out_f32 = attention_module_forward(params, q, k, v, s, pos_q, pos_k,
                                       None, None, num_layers=L, nheads=H,
                                       mxu_dtype=jnp.float32)
    out_f32 = jax.block_until_ready(out_f32)
    assert out_f32.shape == (1, Sq, B, D), out_f32.shape
    err = float(jnp.max(jnp.abs(out_f32 - ref)))
    assert err < 2e-4, err

    # 2) masked path (mask_q + mask_k), f32.
    mask_q = jnp.zeros((B, Sq), bool).at[:, -1].set(True)
    mask_k = jnp.zeros((B, Sk), bool).at[:, -2:].set(True)
    out_m = attention_module_forward(params, q, k, v, s, pos_q, pos_k,
                                     mask_q, mask_k, num_layers=L, nheads=H,
                                     mxu_dtype=jnp.float32)
    out_m = jax.block_until_ready(out_m)
    ref_m = _ref_forward(params, q, k, v, s, pos_q, pos_k, mask_q, mask_k, L, H)
    err_m = float(jnp.max(jnp.abs(out_m - ref_m)))
    assert err_m < 2e-4, err_m

    # 3) production bf16-MXU path (f32 accumulation / softmax / LN), looser tol.
    out_bf = attention_module_forward(params, q, k, v, s, pos_q, pos_k,
                                      None, None, num_layers=L, nheads=H,
                                      mxu_dtype=jnp.bfloat16)
    out_bf = jax.block_until_ready(out_bf)
    err_bf = float(jnp.max(jnp.abs(out_bf - ref)))
    assert err_bf < 5e-2, err_bf

    print("KERNEL_OK")
</pallas_src>

<mosaic_0001>
module attributes {stable_mosaic.version = 11 : i64} {
  func.func @_fused_stack_kernel(%arg0: i32, %arg1: i32, %arg2: memref<1x8x32xf32, #tpu.memory_space<vmem>>, %arg3: memref<1x16x32xf32, #tpu.memory_space<vmem>>, %arg4: memref<1x16x32xf32, #tpu.memory_space<vmem>>, %arg5: memref<1x8x16xf32, #tpu.memory_space<vmem>>, %arg6: memref<1x8x32xf32, #tpu.memory_space<vmem>>, %arg7: memref<32x32xf32, #tpu.memory_space<vmem>>, %arg8: memref<32x32xf32, #tpu.memory_space<vmem>>, %arg9: memref<32x32xf32, #tpu.memory_space<vmem>>, %arg10: memref<32x32xf32, #tpu.memory_space<vmem>>, %arg11: memref<32x64xf32, #tpu.memory_space<vmem>>, %arg12: memref<64x32xf32, #tpu.memory_space<vmem>>, %arg13: memref<1x32xf32, #tpu.memory_space<vmem>>, %arg14: memref<1x32xf32, #tpu.memory_space<vmem>>, %arg15: memref<1x32xf32, #tpu.memory_space<vmem>>, %arg16: memref<1x32xf32, #tpu.memory_space<vmem>>, %arg17: memref<1x64xf32, #tpu.memory_space<vmem>>, %arg18: memref<1x32xf32, #tpu.memory_space<vmem>>, %arg19: memref<1x32xf32, #tpu.memory_space<vmem>>, %arg20: memref<1x32xf32, #tpu.memory_space<vmem>>, %arg21: memref<1x32xf32, #tpu.memory_space<vmem>>, %arg22: memref<1x32xf32, #tpu.memory_space<vmem>>, %arg23: memref<1x32xf32, #tpu.memory_space<vmem>>, %arg24: memref<1x32xf32, #tpu.memory_space<vmem>>, %arg25: memref<1x8x32xf32, #tpu.memory_space<vmem>>) attributes {dimension_semantics = [#tpu.dimension_semantics<parallel>, #tpu.dimension_semantics<parallel>], iteration_bounds = array<i64: 2, 1>, scalar_prefetch = 0 : i64, scratch_operands = 0 : i64, tpu.core_type = #tpu.core_type<tc>, window_params = [{transform_indices = @transform_0, window_bounds = array<i64: 1, 8, 32>}, {transform_indices = @transform_1, window_bounds = array<i64: 1, 16, 32>}, {transform_indices = @transform_2, window_bounds = array<i64: 1, 16, 32>}, {transform_indices = @transform_3, window_bounds = array<i64: 1, 8, 16>}, {transform_indices = @transform_4, window_bounds = array<i64: 1, 8, 32>}, {pipeline_mode = #tpu.pipeline_mode<synchronous>, transform_indices = @transform_5, window_bounds = array<i64: 32, 32>}, {pipeline_mode = #tpu.pipeline_mode<synchronous>, transform_indices = @transform_6, window_bounds = array<i64: 32, 32>}, {pipeline_mode = #tpu.pipeline_mode<synchronous>, transform_indices = @transform_7, window_bounds = array<i64: 32, 32>}, {pipeline_mode = #tpu.pipeline_mode<synchronous>, transform_indices = @transform_8, window_bounds = array<i64: 32, 32>}, {pipeline_mode = #tpu.pipeline_mode<synchronous>, transform_indices = @transform_9, window_bounds = array<i64: 32, 64>}, {pipeline_mode = #tpu.pipeline_mode<synchronous>, transform_indices = @transform_10, window_bounds = array<i64: 64, 32>}, {pipeline_mode = #tpu.pipeline_mode<synchronous>, transform_indices = @transform_11, window_bounds = array<i64: 1, 32>}, {pipeline_mode = #tpu.pipeline_mode<synchronous>, transform_indices = @transform_12, window_bounds = array<i64: 1, 32>}, {pipeline_mode = #tpu.pipeline_mode<synchronous>, transform_indices = @transform_13, window_bounds = array<i64: 1, 32>}, {pipeline_mode = #tpu.pipeline_mode<synchronous>, transform_indices = @transform_14, window_bounds = array<i64: 1, 32>}, {pipeline_mode = #tpu.pipeline_mode<synchronous>, transform_indices = @transform_15, window_bounds = array<i64: 1, 64>}, {pipeline_mode = #tpu.pipeline_mode<synchronous>, transform_indices = @transform_16, window_bounds = array<i64: 1, 32>}, {pipeline_mode = #tpu.pipeline_mode<synchronous>, transform_indices = @transform_17, window_bounds = array<i64: 1, 32>}, {pipeline_mode = #tpu.pipeline_mode<synchronous>, transform_indices = @transform_18, window_bounds = array<i64: 1, 32>}, {pipeline_mode = #tpu.pipeline_mode<synchronous>, transform_indices = @transform_19, window_bounds = array<i64: 1, 32>}, {pipeline_mode = #tpu.pipeline_mode<synchronous>, transform_indices = @transform_20, window_bounds = array<i64: 1, 32>}, {pipeline_mode = #tpu.pipeline_mode<synchronous>, transform_indices = @transform_21, window_bounds = array<i64: 1, 32>}, {pipeline_mode = #tpu.pipeline_mode<synchronous>, transform_indices = @transform_22, window_bounds = array<i64: 1, 32>}, {transform_indices = @transform_23, window_bounds = array<i64: 1, 8, 32>}]} {
    %c0 = arith.constant 0 : index
    %c0_0 = arith.constant 0 : index
    %c0_1 = arith.constant 0 : index
    %0 = vector.load %arg2[%c0, %c0_0, %c0_1] : memref<1x8x32xf32, #tpu.memory_space<vmem>>, vector<1x8x32xf32>
    %1 = vector.shape_cast %0 : vector<1x8x32xf32> to vector<8x32xf32>
    %c0_2 = arith.constant 0 : index
    %c0_3 = arith.constant 0 : index
    %c0_4 = arith.constant 0 : index
    %2 = vector.load %arg3[%c0_2, %c0_3, %c0_4] : memref<1x16x32xf32, #tpu.memory_space<vmem>>, vector<1x16x32xf32>
    %3 = vector.shape_cast %2 : vector<1x16x32xf32> to vector<16x32xf32>
    %c0_5 = arith.constant 0 : index
    %c0_6 = arith.constant 0 : index
    %c0_7 = arith.constant 0 : index
    %4 = vector.load %arg4[%c0_5, %c0_6, %c0_7] : memref<1x16x32xf32, #tpu.memory_space<vmem>>, vector<1x16x32xf32>
    %5 = vector.shape_cast %4 : vector<1x16x32xf32> to vector<16x32xf32>
    %c0_8 = arith.constant 0 : index
    %c0_9 = arith.constant 0 : index
    %c0_10 = arith.constant 0 : index
    %6 = vector.load %arg5[%c0_8, %c0_9, %c0_10] : memref<1x8x16xf32, #tpu.memory_space<vmem>>, vector<1x8x16xf32>
    %7 = vector.shape_cast %6 : vector<1x8x16xf32> to vector<8x16xf32>
    %c0_11 = arith.constant 0 : index
    %c0_12 = arith.constant 0 : index
    %8 = vector.load %arg7[%c0_11, %c0_12] : memref<32x32xf32, #tpu.memory_space<vmem>>, vector<32x32xf32>
    %c0_13 = arith.constant 0 : index
    %c0_14 = arith.constant 0 : index
    %9 = vector.load %arg8[%c0_13, %c0_14] : memref<32x32xf32, #tpu.memory_space<vmem>>, vector<32x32xf32>
    %c0_15 = arith.constant 0 : index
    %c0_16 = arith.constant 0 : index
    %10 = vector.load %arg9[%c0_15, %c0_16] : memref<32x32xf32, #tpu.memory_space<vmem>>, vector<32x32xf32>
    %c0_17 = arith.constant 0 : index
    %c0_18 = arith.constant 0 : index
    %11 = vector.load %arg10[%c0_17, %c0_18] : memref<32x32xf32, #tpu.memory_space<vmem>>, vector<32x32xf32>
    %c0_19 = arith.constant 0 : index
    %c0_20 = arith.constant 0 : index
    %12 = vector.load %arg11[%c0_19, %c0_20] : memref<32x64xf32, #tpu.memory_space<vmem>>, vector<32x64xf32>
    %c0_21 = arith.constant 0 : index
    %c0_22 = arith.constant 0 : index
    %13 = vector.load %arg12[%c0_21, %c0_22] : memref<64x32xf32, #tpu.memory_space<vmem>>, vector<64x32xf32>
    %c0_23 = arith.constant 0 : index
    %c0_24 = arith.constant 0 : index
    %14 = vector.load %arg13[%c0_23, %c0_24] : memref<1x32xf32, #tpu.memory_space<vmem>>, vector<1x32xf32>
    %c0_25 = arith.constant 0 : index
    %c0_26 = arith.constant 0 : index
    %15 = vector.load %arg14[%c0_25, %c0_26] : memref<1x32xf32, #tpu.memory_space<vmem>>, vector<1x32xf32>
    %c0_27 = arith.constant 0 : index
    %c0_28 = arith.constant 0 : index
    %16 = vector.load %arg15[%c0_27, %c0_28] : memref<1x32xf32, #tpu.memory_space<vmem>>, vector<1x32xf32>
    %c0_29 = arith.constant 0 : index
    %c0_30 = arith.constant 0 : index
    %17 = vector.load %arg16[%c0_29, %c0_30] : memref<1x32xf32, #tpu.memory_space<vmem>>, vector<1x32xf32>
    %c0_31 = arith.constant 0 : index
    %c0_32 = arith.constant 0 : index
    %18 = vector.load %arg17[%c0_31, %c0_32] : memref<1x64xf32, #tpu.memory_space<vmem>>, vector<1x64xf32>
    %c0_33 = arith.constant 0 : index
    %c0_34 = arith.constant 0 : index
    %19 = vector.load %arg18[%c0_33, %c0_34] : memref<1x32xf32, #tpu.memory_space<vmem>>, vector<1x32xf32>
    %c0_35 = arith.constant 0 : index
    %c0_36 = arith.constant 0 : index
    %20 = vector.load %arg19[%c0_35, %c0_36] : memref<1x32xf32, #tpu.memory_space<vmem>>, vector<1x32xf32>
    %c0_37 = arith.constant 0 : index
    %c0_38 = arith.constant 0 : index
    %21 = vector.load %arg20[%c0_37, %c0_38] : memref<1x32xf32, #tpu.memory_space<vmem>>, vector<1x32xf32>
    %c0_39 = arith.constant 0 : index
    %c0_40 = arith.constant 0 : index
    %22 = vector.load %arg21[%c0_39, %c0_40] : memref<1x32xf32, #tpu.memory_space<vmem>>, vector<1x32xf32>
    %c0_41 = arith.constant 0 : index
    %c0_42 = arith.constant 0 : index
    %23 = vector.load %arg22[%c0_41, %c0_42] : memref<1x32xf32, #tpu.memory_space<vmem>>, vector<1x32xf32>
    %c0_43 = arith.constant 0 : index
    %c0_44 = arith.constant 0 : index
    %24 = vector.load %arg23[%c0_43, %c0_44] : memref<1x32xf32, #tpu.memory_space<vmem>>, vector<1x32xf32>
    %c0_45 = arith.constant 0 : index
    %c0_46 = arith.constant 0 : index
    %25 = vector.load %arg24[%c0_45, %c0_46] : memref<1x32xf32, #tpu.memory_space<vmem>>, vector<1x32xf32>
    %cst = arith.constant dense<0.000000e+00> : vector<16x32xf32>
    %26 = tpu.matmul %3, %9, %cst {dimension_numbers = #tpu.dot_dimension_numbers<[1], [0], [0], [1], [0, 0, 1, 1], [], []>} : vector<16x32xf32>, vector<32x32xf32>, vector<16x32xf32> -> vector<16x32xf32>
    %27 = vector.broadcast %15 : vector<1x32xf32> to vector<16x32xf32>
    %28 = arith.addf %26, %27 : vector<16x32xf32>
    %cst_47 = arith.constant dense<0.000000e+00> : vector<16x32xf32>
    %29 = tpu.matmul %5, %10, %cst_47 {dimension_numbers = #tpu.dot_dimension_numbers<[1], [0], [0], [1], [0, 0, 1, 1], [], []>} : vector<16x32xf32>, vector<32x32xf32>, vector<16x32xf32> -> vector<16x32xf32>
    %30 = vector.broadcast %16 : vector<1x32xf32> to vector<16x32xf32>
    %31 = arith.addf %29, %30 : vector<16x32xf32>
    %c0_48 = arith.constant 0 : index
    %c0_49 = arith.constant 0 : index
    %c0_50 = arith.constant 0 : index
    %32 = vector.load %arg6[%c0_48, %c0_49, %c0_50] : memref<1x8x32xf32, #tpu.memory_space<vmem>>, vector<1x8x32xf32>
    %33 = vector.shape_cast %32 : vector<1x8x32xf32> to vector<8x32xf32>
    %c0_i32 = arith.constant 0 : i32
    %c2_i32 = arith.constant 2 : i32
    %34 = arith.addi %c0_i32, %c2_i32 : i32
    %c1_i32 = arith.constant 1 : i32
    %35 = scf.for %arg26 = %c0_i32 to %34 step %c1_i32 iter_args(%arg27 = %1) -> (vector<8x32xf32>)  : i32 {
      %61 = arith.addf %arg27, %33 : vector<8x32xf32>
      %cst_59 = arith.constant dense<0.000000e+00> : vector<8x32xf32>
      %62 = tpu.matmul %61, %8, %cst_59 {dimension_numbers = #tpu.dot_dimension_numbers<[1], [0], [0], [1], [0, 0, 1, 1], [], []>} : vector<8x32xf32>, vector<32x32xf32>, vector<8x32xf32> -> vector<8x32xf32>
      %63 = vector.broadcast %14 : vector<1x32xf32> to vector<8x32xf32>
      %64 = arith.addf %62, %63 : vector<8x32xf32>
      %cst_60 = arith.constant 0.353553385 : f32
      %65 = vector.broadcast %cst_60 : f32 to vector<8x32xf32>
      %66 = arith.mulf %64, %65 : vector<8x32xf32>
      %67 = vector.extract_strided_slice %66 {offsets = [0, 0], sizes = [8, 8], strides = [1, 1]} : vector<8x32xf32> to vector<8x8xf32>
      %68 = vector.extract_strided_slice %28 {offsets = [0, 0], sizes = [16, 8], strides = [1, 1]} : vector<16x32xf32> to vector<16x8xf32>
      %69 = vector.extract_strided_slice %31 {offsets = [0, 0], sizes = [16, 8], strides = [1, 1]} : vector<16x32xf32> to vector<16x8xf32>
      %cst_61 = arith.constant dense<0.000000e+00> : vector<8x16xf32>
      %70 = tpu.matmul %67, %68, %cst_61 {dimension_numbers = #tpu.dot_dimension_numbers<[1], [1], [0], [0], [0, 0, 1, 0], [], []>} : vector<8x8xf32>, vector<16x8xf32>, vector<8x16xf32> -> vector<8x16xf32>
      %71 = arith.addf %70, %7 : vector<8x16xf32>
      %cst_62 = arith.constant dense<0xFF800000> : vector<8xf32>
      %72 = vector.multi_reduction <maximumf>, %71, %cst_62 [1] : vector<8x16xf32> to vector<8xf32>
      %73 = vector.shape_cast %72 : vector<8xf32> to vector<8x1xf32>
      %74 = vector.broadcast %73 : vector<8x1xf32> to vector<8x16xf32>
      %75 = arith.subf %71, %74 : vector<8x16xf32>
      %76 = math.exp %75 : vector<8x16xf32>
      %cst_63 = arith.constant dense<0.000000e+00> : vector<8xf32>
      %77 = vector.multi_reduction <add>, %76, %cst_63 [1] : vector<8x16xf32> to vector<8xf32>
      %78 = vector.shape_cast %77 : vector<8xf32> to vector<8x1xf32>
      %79 = tpu.reciprocal %78 {approx = true} : vector<8x1xf32> -> vector<8x1xf32>
      %80 = arith.mulf %78, %79 : vector<8x1xf32>
      %cst_64 = arith.constant 2.000000e+00 : f32
      %81 = vector.broadcast %cst_64 : f32 to vector<8x1xf32>
      %82 = arith.subf %81, %80 : vector<8x1xf32>
      %83 = arith.mulf %79, %82 : vector<8x1xf32>
      %cst_65 = arith.constant dense<0.000000e+00> : vector<8x8xf32>
      %84 = tpu.matmul %76, %69, %cst_65 {dimension_numbers = #tpu.dot_dimension_numbers<[1], [0], [0], [1], [0, 0, 1, 1], [], []>} : vector<8x16xf32>, vector<16x8xf32>, vector<8x8xf32> -> vector<8x8xf32>
      %85 = vector.broadcast %83 : vector<8x1xf32> to vector<8x8xf32>
      %86 = arith.mulf %84, %85 : vector<8x8xf32>
      %87 = vector.extract_strided_slice %11 {offsets = [0, 0], sizes = [8, 32], strides = [1, 1]} : vector<32x32xf32> to vector<8x32xf32>
      %cst_66 = arith.constant dense<0.000000e+00> : vector<8x32xf32>
      %88 = tpu.matmul %86, %87, %cst_66 {dimension_numbers = #tpu.dot_dimension_numbers<[1], [0], [0], [1], [0, 0, 1, 1], [], []>} : vector<8x8xf32>, vector<8x32xf32>, vector<8x32xf32> -> vector<8x32xf32>
      %89 = vector.extract_strided_slice %66 {offsets = [0, 8], sizes = [8, 8], strides = [1, 1]} : vector<8x32xf32> to vector<8x8xf32>
      %90 = vector.extract_strided_slice %28 {offsets = [0, 8], sizes = [16, 8], strides = [1, 1]} : vector<16x32xf32> to vector<16x8xf32>
      %91 = vector.extract_strided_slice %31 {offsets = [0, 8], sizes = [16, 8], strides = [1, 1]} : vector<16x32xf32> to vector<16x8xf32>
      %cst_67 = arith.constant dense<0.000000e+00> : vector<8x16xf32>
      %92 = tpu.matmul %89, %90, %cst_67 {dimension_numbers = #tpu.dot_dimension_numbers<[1], [1], [0], [0], [0, 0, 1, 0], [], []>} : vector<8x8xf32>, vector<16x8xf32>, vector<8x16xf32> -> vector<8x16xf32>
      %93 = arith.addf %92, %7 : vector<8x16xf32>
      %cst_68 = arith.constant dense<0xFF800000> : vector<8xf32>
      %94 = vector.multi_reduction <maximumf>, %93, %cst_68 [1] : vector<8x16xf32> to vector<8xf32>
      %95 = vector.shape_cast %94 : vector<8xf32> to vector<8x1xf32>
      %96 = vector.broadcast %95 : vector<8x1xf32> to vector<8x16xf32>
      %97 = arith.subf %93, %96 : vector<8x16xf32>
      %98 = math.exp %97 : vector<8x16xf32>
      %cst_69 = arith.constant dense<0.000000e+00> : vector<8xf32>
      %99 = vector.multi_reduction <add>, %98, %cst_69 [1] : vector<8x16xf32> to vector<8xf32>
      %100 = vector.shape_cast %99 : vector<8xf32> to vector<8x1xf32>
      %101 = tpu.reciprocal %100 {approx = true} : vector<8x1xf32> -> vector<8x1xf32>
      %102 = arith.mulf %100, %101 : vector<8x1xf32>
      %cst_70 = arith.constant 2.000000e+00 : f32
      %103 = vector.broadcast %cst_70 : f32 to vector<8x1xf32>
      %104 = arith.subf %103, %102 : vector<8x1xf32>
      %105 = arith.mulf %101, %104 : vector<8x1xf32>
      %cst_71 = arith.constant dense<0.000000e+00> : vector<8x8xf32>
      %106 = tpu.matmul %98, %91, %cst_71 {dimension_numbers = #tpu.dot_dimension_numbers<[1], [0], [0], [1], [0, 0, 1, 1], [], []>} : vector<8x16xf32>, vector<16x8xf32>, vector<8x8xf32> -> vector<8x8xf32>
      %107 = vector.broadcast %105 : vector<8x1xf32> to vector<8x8xf32>
      %108 = arith.mulf %106, %107 : vector<8x8xf32>
      %109 = vector.extract_strided_slice %11 {offsets = [8, 0], sizes = [8, 32], strides = [1, 1]} : vector<32x32xf32> to vector<8x32xf32>
      %cst_72 = arith.constant dense<0.000000e+00> : vector<8x32xf32>
      %110 = tpu.matmul %108, %109, %cst_72 {dimension_numbers = #tpu.dot_dimension_numbers<[1], [0], [0], [1], [0, 0, 1, 1], [], []>} : vector<8x8xf32>, vector<8x32xf32>, vector<8x32xf32> -> vector<8x32xf32>
      %111 = arith.addf %88, %110 : vector<8x32xf32>
      %112 = vector.extract_strided_slice %66 {offsets = [0, 16], sizes = [8, 8], strides = [1, 1]} : vector<8x32xf32> to vector<8x8xf32>
      %113 = vector.extract_strided_slice %28 {offsets = [0, 16], sizes = [16, 8], strides = [1, 1]} : vector<16x32xf32> to vector<16x8xf32>
      %114 = vector.extract_strided_slice %31 {offsets = [0, 16], sizes = [16, 8], strides = [1, 1]} : vector<16x32xf32> to vector<16x8xf32>
      %cst_73 = arith.constant dense<0.000000e+00> : vector<8x16xf32>
      %115 = tpu.matmul %112, %113, %cst_73 {dimension_numbers = #tpu.dot_dimension_numbers<[1], [1], [0], [0], [0, 0, 1, 0], [], []>} : vector<8x8xf32>, vector<16x8xf32>, vector<8x16xf32> -> vector<8x16xf32>
      %116 = arith.addf %115, %7 : vector<8x16xf32>
      %cst_74 = arith.constant dense<0xFF800000> : vector<8xf32>
      %117 = vector.multi_reduction <maximumf>, %116, %cst_74 [1] : vector<8x16xf32> to vector<8xf32>
      %118 = vector.shape_cast %117 : vector<8xf32> to vector<8x1xf32>
      %119 = vector.broadcast %118 : vector<8x1xf32> to vector<8x16xf32>
      %120 = arith.subf %116, %119 : vector<8x16xf32>
      %121 = math.exp %120 : vector<8x16xf32>
      %cst_75 = arith.constant dense<0.000000e+00> : vector<8xf32>
      %122 = vector.multi_reduction <add>, %121, %cst_75 [1] : vector<8x16xf32> to vector<8xf32>
      %123 = vector.shape_cast %122 : vector<8xf32> to vector<8x1xf32>
      %124 = tpu.reciprocal %123 {approx = true} : vector<8x1xf32> -> vector<8x1xf32>
      %125 = arith.mulf %123, %124 : vector<8x1xf32>
      %cst_76 = arith.constant 2.000000e+00 : f32
      %126 = vector.broadcast %cst_76 : f32 to vector<8x1xf32>
      %127 = arith.subf %126, %125 : vector<8x1xf32>
      %128 = arith.mulf %124, %127 : vector<8x1xf32>
      %cst_77 = arith.constant dense<0.000000e+00> : vector<8x8xf32>
      %129 = tpu.matmul %121, %114, %cst_77 {dimension_numbers = #tpu.dot_dimension_numbers<[1], [0], [0], [1], [0, 0, 1, 1], [], []>} : vector<8x16xf32>, vector<16x8xf32>, vector<8x8xf32> -> vector<8x8xf32>
      %130 = vector.broadcast %128 : vector<8x1xf32> to vector<8x8xf32>
      %131 = arith.mulf %129, %130 : vector<8x8xf32>
      %132 = vector.extract_strided_slice %11 {offsets = [16, 0], sizes = [8, 32], strides = [1, 1]} : vector<32x32xf32> to vector<8x32xf32>
      %cst_78 = arith.constant dense<0.000000e+00> : vector<8x32xf32>
      %133 = tpu.matmul %131, %132, %cst_78 {dimension_numbers = #tpu.dot_dimension_numbers<[1], [0], [0], [1], [0, 0, 1, 1], [], []>} : vector<8x8xf32>, vector<8x32xf32>, vector<8x32xf32> -> vector<8x32xf32>
      %134 = arith.addf %111, %133 : vector<8x32xf32>
      %135 = vector.extract_strided_slice %66 {offsets = [0, 24], sizes = [8, 8], strides = [1, 1]} : vector<8x32xf32> to vector<8x8xf32>
      %136 = vector.extract_strided_slice %28 {offsets = [0, 24], sizes = [16, 8], strides = [1, 1]} : vector<16x32xf32> to vector<16x8xf32>
      %137 = vector.extract_strided_slice %31 {offsets = [0, 24], sizes = [16, 8], strides = [1, 1]} : vector<16x32xf32> to vector<16x8xf32>
      %cst_79 = arith.constant dense<0.000000e+00> : vector<8x16xf32>
      %138 = tpu.matmul %135, %136, %cst_79 {dimension_numbers = #tpu.dot_dimension_numbers<[1], [1], [0], [0], [0, 0, 1, 0], [], []>} : vector<8x8xf32>, vector<16x8xf32>, vector<8x16xf32> -> vector<8x16xf32>
      %139 = arith.addf %138, %7 : vector<8x16xf32>
      %cst_80 = arith.constant dense<0xFF800000> : vector<8xf32>
      %140 = vector.multi_reduction <maximumf>, %139, %cst_80 [1] : vector<8x16xf32> to vector<8xf32>
      %141 = vector.shape_cast %140 : vector<8xf32> to vector<8x1xf32>
      %142 = vector.broadcast %141 : vector<8x1xf32> to vector<8x16xf32>
      %143 = arith.subf %139, %142 : vector<8x16xf32>
      %144 = math.exp %143 : vector<8x16xf32>
      %cst_81 = arith.constant dense<0.000000e+00> : vector<8xf32>
      %145 = vector.multi_reduction <add>, %144, %cst_81 [1] : vector<8x16xf32> to vector<8xf32>
      %146 = vector.shape_cast %145 : vector<8xf32> to vector<8x1xf32>
      %147 = tpu.reciprocal %146 {approx = true} : vector<8x1xf32> -> vector<8x1xf32>
      %148 = arith.mulf %146, %147 : vector<8x1xf32>
      %cst_82 = arith.constant 2.000000e+00 : f32
      %149 = vector.broadcast %cst_82 : f32 to vector<8x1xf32>
      %150 = arith.subf %149, %148 : vector<8x1xf32>
      %151 = arith.mulf %147, %150 : vector<8x1xf32>
      %cst_83 = arith.constant dense<0.000000e+00> : vector<8x8xf32>
      %152 = tpu.matmul %144, %137, %cst_83 {dimension_numbers = #tpu.dot_dimension_numbers<[1], [0], [0], [1], [0, 0, 1, 1], [], []>} : vector<8x16xf32>, vector<16x8xf32>, vector<8x8xf32> -> vector<8x8xf32>
      %153 = vector.broadcast %151 : vector<8x1xf32> to vector<8x8xf32>
      %154 = arith.mulf %152, %153 : vector<8x8xf32>
      %155 = vector.extract_strided_slice %11 {offsets = [24, 0], sizes = [8, 32], strides = [1, 1]} : vector<32x32xf32> to vector<8x32xf32>
      %cst_84 = arith.constant dense<0.000000e+00> : vector<8x32xf32>
      %156 = tpu.matmul %154, %155, %cst_84 {dimension_numbers = #tpu.dot_dimension_numbers<[1], [0], [0], [1], [0, 0, 1, 1], [], []>} : vector<8x8xf32>, vector<8x32xf32>, vector<8x32xf32> -> vector<8x32xf32>
      %157 = arith.addf %134, %156 : vector<8x32xf32>
      %158 = vector.broadcast %17 : vector<1x32xf32> to vector<8x32xf32>
      %159 = arith.addf %157, %158 : vector<8x32xf32>
      %160 = arith.addf %arg27, %159 : vector<8x32xf32>
      %cst_85 = arith.constant dense<0.000000e+00> : vector<8xf32>
      %161 = vector.multi_reduction <add>, %160, %cst_85 [1] : vector<8x32xf32> to vector<8xf32>
      %162 = vector.shape_cast %161 : vector<8xf32> to vector<8x1xf32>
      %cst_86 = arith.constant 3.200000e+01 : f32
      %163 = vector.broadcast %cst_86 : f32 to vector<8x1xf32>
      %164 = arith.divf %162, %163 : vector<8x1xf32>
      %165 = vector.broadcast %164 : vector<8x1xf32> to vector<8x32xf32>
      %166 = arith.subf %160, %165 : vector<8x32xf32>
      %167 = arith.mulf %166, %166 : vector<8x32xf32>
      %cst_87 = arith.constant dense<0.000000e+00> : vector<8xf32>
      %168 = vector.multi_reduction <add>, %167, %cst_87 [1] : vector<8x32xf32> to vector<8xf32>
      %169 = vector.shape_cast %168 : vector<8xf32> to vector<8x1xf32>
      %cst_88 = arith.constant 3.200000e+01 : f32
      %170 = vector.broadcast %cst_88 : f32 to vector<8x1xf32>
      %171 = arith.divf %169, %170 : vector<8x1xf32>
      %172 = vector.broadcast %164 : vector<8x1xf32> to vector<8x32xf32>
      %173 = arith.subf %160, %172 : vector<8x32xf32>
      %cst_89 = arith.constant 9.99999974E-6 : f32
      %174 = vector.broadcast %cst_89 : f32 to vector<8x1xf32>
      %175 = arith.addf %171, %174 : vector<8x1xf32>
      %176 = math.rsqrt %175 : vector<8x1xf32>
      %177 = vector.broadcast %176 : vector<8x1xf32> to vector<8x32xf32>
      %178 = arith.mulf %173, %177 : vector<8x32xf32>
      %179 = vector.broadcast %20 : vector<1x32xf32> to vector<8x32xf32>
      %180 = arith.mulf %178, %179 : vector<8x32xf32>
      %181 = vector.broadcast %21 : vector<1x32xf32> to vector<8x32xf32>
      %182 = arith.addf %180, %181 : vector<8x32xf32>
      %cst_90 = arith.constant dense<0.000000e+00> : vector<8x64xf32>
      %183 = tpu.matmul %182, %12, %cst_90 {dimension_numbers = #tpu.dot_dimension_numbers<[1], [0], [0], [1], [0, 0, 1, 1], [], []>} : vector<8x32xf32>, vector<32x64xf32>, vector<8x64xf32> -> vector<8x64xf32>
      %184 = vector.broadcast %18 : vector<1x64xf32> to vector<8x64xf32>
      %185 = arith.addf %183, %184 : vector<8x64xf32>
      %cst_91 = arith.constant 0.000000e+00 : f32
      %186 = vector.broadcast %cst_91 : f32 to vector<8x64xf32>
      %187 = arith.maximumf %185, %186 : vector<8x64xf32>
      %cst_92 = arith.constant dense<0.000000e+00> : vector<8x32xf32>
      %188 = tpu.matmul %187, %13, %cst_92 {dimension_numbers = #tpu.dot_dimension_numbers<[1], [0], [0], [1], [0, 0, 1, 1], [], []>} : vector<8x64xf32>, vector<64x32xf32>, vector<8x32xf32> -> vector<8x32xf32>
      %189 = vector.broadcast %19 : vector<1x32xf32> to vector<8x32xf32>
      %190 = arith.addf %188, %189 : vector<8x32xf32>
      %191 = arith.addf %182, %190 : vector<8x32xf32>
      %cst_93 = arith.constant dense<0.000000e+00> : vector<8xf32>
      %192 = vector.multi_reduction <add>, %191, %cst_93 [1] : vector<8x32xf32> to vector<8xf32>
      %193 = vector.shape_cast %192 : vector<8xf32> to vector<8x1xf32>
      %cst_94 = arith.constant 3.200000e+01 : f32
      %194 = vector.broadcast %cst_94 : f32 to vector<8x1xf32>
      %195 = arith.divf %193, %194 : vector<8x1xf32>
      %196 = vector.broadcast %195 : vector<8x1xf32> to vector<8x32xf32>
      %197 = arith.subf %191, %196 : vector<8x32xf32>
      %198 = arith.mulf %197, %197 : vector<8x32xf32>
      %cst_95 = arith.constant dense<0.000000e+00> : vector<8xf32>
      %199 = vector.multi_reduction <add>, %198, %cst_95 [1] : vector<8x32xf32> to vector<8xf32>
      %200 = vector.shape_cast %199 : vector<8xf32> to vector<8x1xf32>
      %cst_96 = arith.constant 3.200000e+01 : f32
      %201 = vector.broadcast %cst_96 : f32 to vector<8x1xf32>
      %202 = arith.divf %200, %201 : vector<8x1xf32>
      %203 = vector.broadcast %195 : vector<8x1xf32> to vector<8x32xf32>
      %204 = arith.subf %191, %203 : vector<8x32xf32>
      %cst_97 = arith.constant 9.99999974E-6 : f32
      %205 = vector.broadcast %cst_97 : f32 to vector<8x1xf32>
      %206 = arith.addf %202, %205 : vector<8x1xf32>
      %207 = math.rsqrt %206 : vector<8x1xf32>
      %208 = vector.broadcast %207 : vector<8x1xf32> to vector<8x32xf32>
      %209 = arith.mulf %204, %208 : vector<8x32xf32>
      %210 = vector.broadcast %22 : vector<1x32xf32> to vector<8x32xf32>
      %211 = arith.mulf %209, %210 : vector<8x32xf32>
      %212 = vector.broadcast %23 : vector<1x32xf32> to vector<8x32xf32>
      %213 = arith.addf %211, %212 : vector<8x32xf32>
      scf.yield %213 : vector<8x32xf32>
    }
    %cst_51 = arith.constant dense<0.000000e+00> : vector<8xf32>
    %36 = vector.multi_reduction <add>, %35, %cst_51 [1] : vector<8x32xf32> to vector<8xf32>
    %37 = vector.shape_cast %36 : vector<8xf32> to vector<8x1xf32>
    %cst_52 = arith.constant 3.200000e+01 : f32
    %38 = vector.broadcast %cst_52 : f32 to vector<8x1xf32>
    %39 = arith.divf %37, %38 : vector<8x1xf32>
    %40 = vector.broadcast %39 : vector<8x1xf32> to vector<8x32xf32>
    %41 = arith.subf %35, %40 : vector<8x32xf32>
    %42 = arith.mulf %41, %41 : vector<8x32xf32>
    %cst_53 = arith.constant dense<0.000000e+00> : vector<8xf32>
    %43 = vector.multi_reduction <add>, %42, %cst_53 [1] : vector<8x32xf32> to vector<8xf32>
    %44 = vector.shape_cast %43 : vector<8xf32> to vector<8x1xf32>
    %cst_54 = arith.constant 3.200000e+01 : f32
    %45 = vector.broadcast %cst_54 : f32 to vector<8x1xf32>
    %46 = arith.divf %44, %45 : vector<8x1xf32>
    %47 = vector.broadcast %39 : vector<8x1xf32> to vector<8x32xf32>
    %48 = arith.subf %35, %47 : vector<8x32xf32>
    %cst_55 = arith.constant 9.99999974E-6 : f32
    %49 = vector.broadcast %cst_55 : f32 to vector<8x1xf32>
    %50 = arith.addf %46, %49 : vector<8x1xf32>
    %51 = math.rsqrt %50 : vector<8x1xf32>
    %52 = vector.broadcast %51 : vector<8x1xf32> to vector<8x32xf32>
    %53 = arith.mulf %48, %52 : vector<8x32xf32>
    %54 = vector.broadcast %24 : vector<1x32xf32> to vector<8x32xf32>
    %55 = arith.mulf %53, %54 : vector<8x32xf32>
    %56 = vector.broadcast %25 : vector<1x32xf32> to vector<8x32xf32>
    %57 = arith.addf %55, %56 : vector<8x32xf32>
    %c0_56 = arith.constant 0 : index
    %c0_57 = arith.constant 0 : index
    %c0_58 = arith.constant 0 : index
    %58 = vector.load %arg25[%c0_56, %c0_57, %c0_58] : memref<1x8x32xf32, #tpu.memory_space<vmem>>, vector<1x8x32xf32>
    %59 = vector.shape_cast %58 : vector<1x8x32xf32> to vector<8x32xf32>
    %60 = vector.shape_cast %57 : vector<8x32xf32> to vector<1x8x32xf32>
    tpu.vector_store %arg25[%c0_56, %c0_57, %c0_58], %60 {strides = array<i32>} : memref<1x8x32xf32, #tpu.memory_space<vmem>>, vector<1x8x32xf32>,
    return
  }
  func.func @transform_0(%arg0: i32, %arg1: i32) -> (i32, i32, i32) {
    %c0_i32 = arith.constant 0 : i32
    %c0_i32_0 = arith.constant 0 : i32
    return %arg0, %arg1, %c0_i32 : i32, i32, i32
  }
  func.func @transform_1(%arg0: i32, %arg1: i32) -> (i32, i32, i32) {
    %c0_i32 = arith.constant 0 : i32
    %c0_i32_0 = arith.constant 0 : i32
    %c0_i32_1 = arith.constant 0 : i32
    return %arg0, %c0_i32, %c0_i32_0 : i32, i32, i32
  }
  func.func @transform_2(%arg0: i32, %arg1: i32) -> (i32, i32, i32) {
    %c0_i32 = arith.constant 0 : i32
    %c0_i32_0 = arith.constant 0 : i32
    %c0_i32_1 = arith.constant 0 : i32
    return %arg0, %c0_i32, %c0_i32_0 : i32, i32, i32
  }
  func.func @transform_3(%arg0: i32, %arg1: i32) -> (i32, i32, i32) {
    %c0_i32 = arith.constant 0 : i32
    %c0_i32_0 = arith.constant 0 : i32
    return %arg0, %arg1, %c0_i32 : i32, i32, i32
  }
  func.func @transform_4(%arg0: i32, %arg1: i32) -> (i32, i32, i32) {
    %c0_i32 = arith.constant 0 : i32
    %c0_i32_0 = arith.constant 0 : i32
    return %arg0, %arg1, %c0_i32 : i32, i32, i32
  }
  func.func @transform_5(%arg0: i32, %arg1: i32) -> (i32, i32) {
    %c0_i32 = arith.constant 0 : i32
    %c0_i32_0 = arith.constant 0 : i32
    %c0_i32_1 = arith.constant 0 : i32
    return %c0_i32, %c0_i32_0 : i32, i32
  }
  func.func @transform_6(%arg0: i32, %arg1: i32) -> (i32, i32) {
    %c0_i32 = arith.constant 0 : i32
    %c0_i32_0 = arith.constant 0 : i32
    %c0_i32_1 = arith.constant 0 : i32
    return %c0_i32, %c0_i32_0 : i32, i32
  }
  func.func @transform_7(%arg0: i32, %arg1: i32) -> (i32, i32) {
    %c0_i32 = arith.constant 0 : i32
    %c0_i32_0 = arith.constant 0 : i32
    %c0_i32_1 = arith.constant 0 : i32
    return %c0_i32, %c0_i32_0 : i32, i32
  }
  func.func @transform_8(%arg0: i32, %arg1: i32) -> (i32, i32) {
    %c0_i32 = arith.constant 0 : i32
    %c0_i32_0 = arith.constant 0 : i32
    %c0_i32_1 = arith.constant 0 : i32
    return %c0_i32, %c0_i32_0 : i32, i32
  }
  func.func @transform_9(%arg0: i32, %arg1: i32) -> (i32, i32) {
    %c0_i32 = arith.constant 0 : i32
    %c0_i32_0 = arith.constant 0 : i32
    %c0_i32_1 = arith.constant 0 : i32
    return %c0_i32, %c0_i32_0 : i32, i32
  }
  func.func @transform_10(%arg0: i32, %arg1: i32) -> (i32, i32) {
    %c0_i32 = arith.constant 0 : i32
    %c0_i32_0 = arith.constant 0 : i32
    %c0_i32_1 = arith.constant 0 : i32
    return %c0_i32, %c0_i32_0 : i32, i32
  }
  func.func @transform_11(%arg0: i32, %arg1: i32) -> (i32, i32) {
    %c0_i32 = arith.constant 0 : i32
    %c0_i32_0 = arith.constant 0 : i32
    %c0_i32_1 = arith.constant 0 : i32
    return %c0_i32, %c0_i32_0 : i32, i32
  }
  func.func @transform_12(%arg0: i32, %arg1: i32) -> (i32, i32) {
    %c0_i32 = arith.constant 0 : i32
    %c0_i32_0 = arith.constant 0 : i32
    %c0_i32_1 = arith.constant 0 : i32
    return %c0_i32, %c0_i32_0 : i32, i32
  }
  func.func @transform_13(%arg0: i32, %arg1: i32) -> (i32, i32) {
    %c0_i32 = arith.constant 0 : i32
    %c0_i32_0 = arith.constant 0 : i32
    %c0_i32_1 = arith.constant 0 : i32
    return %c0_i32, %c0_i32_0 : i32, i32
  }
  func.func @transform_14(%arg0: i32, %arg1: i32) -> (i32, i32) {
    %c0_i32 = arith.constant 0 : i32
    %c0_i32_0 = arith.constant 0 : i32
    %c0_i32_1 = arith.constant 0 : i32
    return %c0_i32, %c0_i32_0 : i32, i32
  }
  func.func @transform_15(%arg0: i32, %arg1: i32) -> (i32, i32) {
    %c0_i32 = arith.constant 0 : i32
    %c0_i32_0 = arith.constant 0 : i32
    %c0_i32_1 = arith.constant 0 : i32
    return %c0_i32, %c0_i32_0 : i32, i32
  }
  func.func @transform_16(%arg0: i32, %arg1: i32) -> (i32, i32) {
    %c0_i32 = arith.constant 0 : i32
    %c0_i32_0 = arith.constant 0 : i32
    %c0_i32_1 = arith.constant 0 : i32
    return %c0_i32, %c0_i32_0 : i32, i32
  }
  func.func @transform_17(%arg0: i32, %arg1: i32) -> (i32, i32) {
    %c0_i32 = arith.constant 0 : i32
    %c0_i32_0 = arith.constant 0 : i32
    %c0_i32_1 = arith.constant 0 : i32
    return %c0_i32, %c0_i32_0 : i32, i32
  }
  func.func @transform_18(%arg0: i32, %arg1: i32) -> (i32, i32) {
    %c0_i32 = arith.constant 0 : i32
    %c0_i32_0 = arith.constant 0 : i32
    %c0_i32_1 = arith.constant 0 : i32
    return %c0_i32, %c0_i32_0 : i32, i32
  }
  func.func @transform_19(%arg0: i32, %arg1: i32) -> (i32, i32) {
    %c0_i32 = arith.constant 0 : i32
    %c0_i32_0 = arith.constant 0 : i32
    %c0_i32_1 = arith.constant 0 : i32
    return %c0_i32, %c0_i32_0 : i32, i32
  }
  func.func @transform_20(%arg0: i32, %arg1: i32) -> (i32, i32) {
    %c0_i32 = arith.constant 0 : i32
    %c0_i32_0 = arith.constant 0 : i32
    %c0_i32_1 = arith.constant 0 : i32
    return %c0_i32, %c0_i32_0 : i32, i32
  }
  func.func @transform_21(%arg0: i32, %arg1: i32) -> (i32, i32) {
    %c0_i32 = arith.constant 0 : i32
    %c0_i32_0 = arith.constant 0 : i32
    %c0_i32_1 = arith.constant 0 : i32
    return %c0_i32, %c0_i32_0 : i32, i32
  }
  func.func @transform_22(%arg0: i32, %arg1: i32) -> (i32, i32) {
    %c0_i32 = arith.constant 0 : i32
    %c0_i32_0 = arith.constant 0 : i32
    %c0_i32_1 = arith.constant 0 : i32
    return %c0_i32, %c0_i32_0 : i32, i32
  }
  func.func @transform_23(%arg0: i32, %arg1: i32) -> (i32, i32, i32) {
    %c0_i32 = arith.constant 0 : i32
    %c0_i32_0 = arith.constant 0 : i32
    return %arg0, %arg1, %c0_i32 : i32, i32, i32
  }
}

</mosaic_0001>

<bundles_post_ra>
// kernel: tpu_custom_call.1
= control target key start
LH: loop header
LB: loop body
LE: loop exit
PB: predicated region body
PF: predicated region fallthrough
CT: control target
= control target key end

     0   :  { %s3052_s0 = inlined_call_operand.hbm [shape: f32[2,8,32], index: 0, kind: input, shape index: {}]   ;;  %s3053_s1 = inlined_call_operand.vmem [shape: f32[2,16,32], index: 1, kind: input, shape index: {}]   ;;  %s3054_s2 = inlined_call_operand.vmem [shape: f32[2,16,32], index: 2, kind: input, shape index: {}]   ;;  %s3055_s3 = inlined_call_operand.hbm [shape: f32[2,8,16], index: 3, kind: input, shape index: {}]   ;;  %s3056_s4 = inlined_call_operand.hbm [shape: f32[2,8,32], index: 4, kind: input, shape index: {}]   ;;  %s3057_s5 = inlined_call_operand.vmem [shape: f32[32,32], index: 5, kind: input, shape index: {}]   ;;  %s3058_s6 = inlined_call_operand.hbm [shape: f32[32,32], index: 6, kind: input, shape index: {}]   ;;  %s3059_s7 = inlined_call_operand.hbm [shape: f32[32,32], index: 7, kind: input, shape index: {}]   ;;  %s3060_s8 = inlined_call_operand.hbm [shape: f32[32,32], index: 8, kind: input, shape index: {}]   ;;  %s3061_s9 = inlined_call_operand.hbm [shape: f32[32,64], index: 9, kind: input, shape index: {}]   ;;  %s3062_s10 = inlined_call_operand.vmem [shape: f32[64,32], index: 10, kind: input, shape index: {}]   ;;  %s3063_s11 = inlined_call_operand.vmem [shape: f32[1,32], index: 11, kind: input, shape index: {}]   ;;  %s3064_s12 = inlined_call_operand.vmem [shape: f32[1,32], index: 12, kind: input, shape index: {}]   ;;  %s3065_s13 = inlined_call_operand.vmem [shape: f32[1,32], index: 13, kind: input, shape index: {}]   ;;  %s3066_s14 = inlined_call_operand.vmem [shape: f32[1,32], index: 14, kind: input, shape index: {}]   ;;  %s3067_s15 = inlined_call_operand.vmem [shape: f32[1,64], index: 15, kind: input, shape index: {}]   ;;  %s3068_s16 = inlined_call_operand.vmem [shape: f32[1,32], index: 16, kind: input, shape index: {}]   ;;  %s3069_s17 = inlined_call_operand.vmem [shape: f32[1,32], index: 17, kind: input, shape index: {}]   ;;  %s3070_s18 = inlined_call_operand.vmem [shape: f32[1,32], index: 18, kind: input, shape index: {}]   ;;  %s3071_s19 = inlined_call_operand.vmem [shape: f32[1,32], index: 19, kind: input, shape index: {}]   ;;  %s3072_s20 = inlined_call_operand.vmem [shape: f32[1,32], index: 20, kind: input, shape index: {}]   ;;  %s3073_s21 = inlined_call_operand.vmem [shape: f32[1,32], index: 21, kind: input, shape index: {}]   ;;  %s3074_s22 = inlined_call_operand.vmem [shape: f32[1,32], index: 22, kind: input, shape index: {}]   ;;  %s3075_s23 = inlined_call_operand.hbm [shape: f32[2,8,32], index: 23, kind: output, shape index: {}]  }
   0x1   :  { %3091 = sst [smem:[#allocation27_spill]] %s3052_s0 }
   0x2   :  { %3092 = sst [smem:[#allocation28_spill]] %s3053_s1 }
   0x3   :  { %3093 = sst [smem:[#allocation29_spill]] %s3054_s2 }
   0x4   :  { %3094 = sst [smem:[#allocation30_spill]] %s3055_s3 }
   0x5   :  { %3095 = sst [smem:[#allocation31_spill]] %s3056_s4 }
   0x6   :  { %3096 = sst [smem:[#allocation32_spill]] %s3057_s5 }
   0x7   :  { %3097 = sst [smem:[#allocation33_spill]] %s3058_s6 }
   0x8   :  { %3098 = sst [smem:[#allocation34_spill]] %s3059_s7 }
   0x9   :  { %3099 = sst [smem:[#allocation35_spill]] %s3060_s8 }
   0xa   :  { %3100 = sst [smem:[#allocation36_spill]] %s3061_s9 }
   0xb   :  { %3101 = sst [smem:[#allocation37_spill]] %s3064_s12 }
   0xc   :  { %3102 = sst [smem:[#allocation38_spill]] %s3065_s13 }
   0xd   :  { %3103 = sst [smem:[#allocation39_spill]] %s3068_s16 }
   0xe   :  { %3104 = sst [smem:[#allocation40_spill]] %s3069_s17 }
   0xf   :  { %3105 = sst [smem:[#allocation41_spill]] %s3070_s18 }
  0x10   :  { %3106 = sst [smem:[#allocation42_spill]] %s3071_s19 }
  0x11   :  { %3107 = sst [smem:[#allocation43_spill]] %s3072_s20 }
  0x12   :  { %3108 = sst [smem:[#allocation44_spill]] %s3073_s21 }
  0x13   :  { %3109 = sst [smem:[#allocation45_spill]] %s3074_s22 }
  0x14   :  { %3110 = sst [smem:[#allocation46_spill]] %s3075_s23 }
  0x15   :  { %28 = vsyncpa [#allocation3], 0 }
  0x16   :  { %30 = vsyncpa [#allocation3 + $0x1], 0 }
  0x17   :  { %31 = vsyncpa [#allocation6], 0 }
  0x18   :  { %33 = vsyncpa [#allocation6 + $0x1], 0 }
  0x19   :  { %34 = vsyncpa [#allocation9], 0 }
  0x1a   :  { %35 = vsyncpa [#allocation12], 0 }
  0x1b   :  { %36 = vsyncpa [#allocation4], 0 }
  0x1c   :  { %38 = vsyncpa [#allocation4 + $0x1], 0  ;;  %s2541_s4 = smov 0   ;;  %s2543_s30 = smov 0  }
  0x1d   :  { %s2545_s24 = smov 0   ;;  %s2547_s25 = smov 0  }
  0x1e   :  { %s2549_s5 = smov 0   ;;  %s2551_s1 = smov 0  }
  0x1f LB: > { %3111 = sst [smem:[#allocation20_spill]] %s2381_s4  ;;  %s2572_s26 = sadd.s32 4294967295, %s2401_s1   ;;  %s2401_s1 = sphi %s2551_s1, %s44_s1   ;;  %s2397_s5 = sphi %s2549_s5, %s3155_s5   ;;  %s2393_s25 = sphi %s2547_s25, %s3154_s25   ;;  %s2389_s24 = sphi %s2545_s24, %s3158_s24   ;;  %s2385_s30 = sphi %s2543_s30, %s3157_s30   ;;  %s2381_s4 = sphi %s2541_s4, %s3156_s4  }
  0x20   : > { %3112 = sst [smem:[#allocation21_spill]] %s2397_s5  ;;  %p1847_p0 = scmp.ge.s32.totalorder %s2401_s1, 1 }
  0x21   : > { %3113 = sst [smem:[#allocation22_spill]] %s2401_s1  ;;  %p79_p1 = scmp.eq.s32.totalorder %s2572_s26, 0 }
  0x22   : > { %p603_p2 = scmp.lt.s32.totalorder %s2401_s1, 3  ;;  %s3114_s27 = sld [smem:[#allocation33_spill]] }
  0x23   : > { %s2411_s29 = smov [#allocation8]   ;;  %p1852_p6 = scmp.ge.s32.totalorder %s2401_s1, 2 }
  0x24   : > { %p2580_p3 = pnand %p1847_p0, %p603_p2  ;;  %s619_s3 = sshll.u32 %s2411_s29, 4  ;;  %s620_s3 = int_to_ptr.vmem [resolvable:$true] %s619_s3 }
  0x25   : > { %s3117_s8 = sld [smem:[#allocation35_spill]]  ;;  %s3078_s29 = smov 128  }
  0x26   : > { %p1937_p4 = pneg %p2580_p3  ;;  %s3080_s23 = smov 8  }
  0x27   : > { %s2414_s13 = smov [#allocation11]   ;;  %s1846_s2 = sadd.s32 4294967294, %s2401_s1  }
  0x28   : > { %s617_s7 = sshll.u32 %s3114_s27, 4  ;;  %p2588_p5 = pnand %p1937_p4, %p79_p1  ;;  %s618_s7 = int_to_ptr.hbm [resolvable:$true] %s617_s7 }
  0x29   : > { %s647_s12 = sshll.u32 %s2414_s13, 4  ;;  %s56_s6 = sadd.s32 1, %s2397_s5  ;;  %s648_s12 = int_to_ptr.vmem [resolvable:$true] %s647_s12 }
  0x2a   : > { %1940 = dma.hbm_to_vmem [thread:$0]  (!%p2588_p5), %s618_s7, 512, %s620_s3, [#allocation9], %s3078_s29, %s3078_s29, %s3080_s23  }
  0x2b   : > { %s645_s27 = sshll.u32 %s3117_s8, 4  ;;  %p58_p7 = scmp.ge.s32.totalorder %s56_s6, 2  ;;  %s646_s27 = int_to_ptr.hbm [resolvable:$true] %s645_s27 }
  0x2c   : > { %1946 = dma.hbm_to_vmem [thread:$0]  (!%p2588_p5), %s646_s27, 512, %s648_s12, [#allocation12], %s3078_s29, %s3078_s29, %s3080_s23  }
  0x2d   : > { %s65_s8 = sadd.s32 1, %s2389_s24  ;;  %p72_p8 = scmp.ne.s32.totalorder %s2389_s24, %s2385_s30 }
  0x2e   : > { %p73_p9 = scmp.eq.s32.totalorder %s2401_s1, 0  ;;  %s3160_s6 = smov (%p58_p7, %s56_s6), 0 }
  0x2f   : > { %3118 = sst [smem:[#allocation23_spill]] %s3160_s6  ;;  %p78_p11 = scmp.ne.s32.totalorder %s2385_s30, %s2381_s4 }
  0x30   : > { %p2614_p10 = por %p73_p9, %p72_p8  ;;  %s60_s12 = ssub.s32 %s2397_s5, %s3160_s6 }
  0x31   : > { %p590_p12 = scmp.eq.s32.totalorder %s2572_s26, 1  ;;  %p63_p13 = scmp.eq.s32.totalorder %s60_s12, 0 }
  0x32   : > { %p2625_p0 = por %p79_p1, %p78_p11  ;;  %p596_p4 = scmp.eq.s32.totalorder %s1846_s2, 1 }
  0x33   : > { %p2629_p2 = por %p590_p12, %p72_p8  ;;  %p1968_p9 = scmp.lt.s32.totalorder %s2401_s1, 2 }
  0x34   : > { %s2634_s27 = scalar_select %p63_p13, %s2389_s24, %s65_s8  }
  0x35   : > { %s3121_s3 = scalar_select %p2629_p2, 1, 0 }
  0x36   : > { %3123 = sst [smem:[#allocation25_spill]] %s2634_s27  ;;  %p2636_p7 = por %p596_p4, %p78_p11 }
  0x37   : > { %3122 = sst [smem:[#allocation24_spill]] %s3121_s3  ;;  %s3088_s23 = sand.u32 1, %s2389_s24  }
  0x38   : > { %s3124_s29 = scalar_select %p2636_p7, 1, 0 }
  0x39   : > { %s2643_s6 = sshll.u32 %s2397_s5, 3  ;;  %s2647_s12 = sshll.u32 %s3088_s23, 3 }
  0x3a   : > { %3125 = sst [smem:[#allocation26_spill]] %s3124_s29  ;;  %p2651_p8 = pnand %p1968_p9, %p2614_p10 }
  0x3b   : > { %s750_s8 = sand.u32 1, %s2401_s1   ;;  %s3127_s3 = sld [smem:[#allocation30_spill]] }
  0x3c   : > { %s754_s22 = scalar_lea.vmem [#allocation5], %s2647_s12  ;;  %s3128_s20 = sld [smem:[#allocation34_spill]] }
  0x3d   : > { %s763_s5 = sshll.u32 %s754_s22, 4  ;;  %s751_s18 = scalar_lea.sflag [#allocation6], %s750_s8  ;;  %s764_s5 = int_to_ptr.vmem [resolvable:$true] %s763_s5 }
  0x3e   : > { %s2415_s1 = smov [#allocation10]   ;;  %s3129_s9 = sld [smem:[#allocation36_spill]] }
  0x3f   : > { %s633_s27 = sshll.u32 %s2415_s1, 4  ;;  %s3131_s23 = smov 128   ;;  %s634_s27 = int_to_ptr.vmem [resolvable:$true] %s633_s27 }
  0x40   : > { %s3132_s1 = sld [smem:[#allocation27_spill]]  ;;  %s718_s2 = scalar_lea.vmem [#allocation2], %s2647_s12 }
  0x41   : > { %s759_s29 = scalar_lea.hbm %s3127_s3, %s2643_s6  ;;  %s3133_s17 = sand.u32 1, %s2389_s24  }
  0x42   : > { %s761_s21 = sshll.u32 %s759_s29, 4  ;;  %s631_s19 = sshll.u32 %s3128_s20, 4  ;;  %s762_s21 = int_to_ptr.hbm [resolvable:$true] %s761_s21  ;;  %s632_s19 = int_to_ptr.hbm [resolvable:$true] %s631_s19 }
  0x43   : > { %1956 = dma.hbm_to_vmem [thread:$0]  (!%p2651_p8), %s762_s21, 128, %s764_s5, %s751_s18  }
  0x44   : > { %s659_s22 = sshll.u32 %s3129_s9, 4  ;;  %s3130_s29 = smov 8   ;;  %s660_s22 = int_to_ptr.hbm [resolvable:$true] %s659_s22 }
  0x45   : > { %1943 = dma.hbm_to_vmem [thread:$0]  (!%p2588_p5), %s632_s19, 512, %s634_s27, [#allocation9], %s3131_s23, %s3131_s23, %s3130_s29  }
  0x46   : > { %s2416_s20 = smov [#allocation13]   ;;  %s723_s13 = scalar_lea.hbm %s3132_s1, %s2643_s6 }
  0x47   : > { %s661_s21 = sshll.u32 %s2416_s20, 4  ;;  %s725_s3 = sshll.u32 %s723_s13, 4  ;;  %s662_s21 = int_to_ptr.vmem [resolvable:$true] %s661_s21  ;;  %s726_s3 = int_to_ptr.hbm [resolvable:$true] %s725_s3 }
  0x48   : > { %1949 = dma.hbm_to_vmem [thread:$0]  (!%p2588_p5), %s660_s22, 512, %s662_s21, [#allocation12], %s3131_s23, %s3131_s23, %s3130_s29  }
  0x49   : > { %s727_s9 = sshll.u32 %s718_s2, 4  ;;  %s715_s19 = scalar_lea.sflag [#allocation3], %s3133_s17  ;;  %s728_s9 = int_to_ptr.vmem [resolvable:$true] %s727_s9 }
  0x4a   : > { %1953 = dma.hbm_to_vmem [thread:$0]  (!%p2651_p8), %s726_s3, 128, %s728_s9, %s715_s19  }
  0x4b   : > { %s3134_s16 = sld [smem:[#allocation31_spill]]  ;;  %s774_s1 = scalar_lea.vmem [#allocation7], %s2647_s12 }
  0x4c   : > { %s783_s0 = sshll.u32 %s774_s1, 4  ;;  %s2698_s22 = sand.u32 (!%p2580_p3), 1, %s2385_s30   ;;  %s784_s0 = int_to_ptr.vmem [resolvable:$true] %s783_s0 }
  0x4d   : > { %s2701_s9 = sshll.u32 (!%p2580_p3), %s2698_s22, 3 }
  0x4e   : > { %s798_s17 = scalar_lea.vmem (!%p2580_p3), [#allocation2], %s2701_s9 }
  0x4f   : > { %792 = sbr.rel (%p2580_p3) target bundleno = 2394 (0x95a), region = 112 }
  0x51   : > { %s779_s5 = scalar_lea.hbm %s3134_s16, %s2643_s6  ;;  %s795_s16 = scalar_lea.sflag (!%p2580_p3), [#allocation3], %s2698_s22 }
  0x52   : > { %s781_s8 = sshll.u32 %s779_s5, 4  ;;  %s782_s8 = int_to_ptr.hbm [resolvable:$true] %s781_s8 }
  0x53   : > { %1959 = dma.hbm_to_vmem [thread:$0]  (!%p2651_p8), %s782_s8, 128, %s784_s0, %s751_s18  }
  0x54   : > { %2360 = dma.done.wait (%p2625_p0), %s795_s16, 128  }
  0x55   : > { %2362 = vsyncadd (%p2625_p0), %s795_s16, 4294967168  ;;  %s804_s18 = sand.u32 1, %s2572_s26   ;;  %s808_s28 = scalar_lea.vmem [#allocation5], %s2701_s9 }
  0x56   : > { %s805_s4 = scalar_lea.sflag [#allocation6], %s804_s18 }
  0x57   : > { %2364 = dma.done.wait (%p2625_p0), %s805_s4, 256  }
  0x58   : > { %2366 = vsyncadd (%p2625_p0), %s805_s4, 4294967040  ;;  %s818_s6 = scalar_lea.vmem [#allocation7], %s2701_s9 }
  0x59   : > { %2368 = dma.done.wait (%p79_p1), [#allocation9], 1024  }
  0x5a   : > { %2370 = vsyncadd (%p79_p1), [#allocation9], 4294966272 }
  0x5b   : > { %2372 = dma.done.wait (%p79_p1), [#allocation12], 1024  }
  0x5c   : > { %2374 = vsyncadd (%p79_p1), [#allocation12], 4294966272  ;;  %v2724_v0 = vld [vmem:[%s798_s17] sm:$0xff]   ;;  %v2726_v1 = vld [vmem:[%s808_s28] sm:$0xff]  ;;  %s3135_s29 = sld [smem:[#allocation32_spill]]  ;;  %p922_p1 = scmp.lt.s32.totalorder %s2393_s25, 1 }
  0x5d   : > { %v2748_v6 = vld [vmem:[#allocation11] sm:$0xff]  ;;  %v2750_v7 = vld [vmem:[#allocation11 + $0x8] sm:$0xff]  ;;  %v2752_v8 = vld [vmem:[#allocation11 + $0x10] sm:$0xff]  ;;  %s3136_s1 = sld [smem:[#allocation39_spill]]  ;;  %vm981_vm0 = vcmask 261120   ;;  %s921_s2 = scalar_lea.vmem [#allocation14], %s2701_s9 }
  0x5e   : > { %v2755_v9 = vld [vmem:[#allocation11 + $0x18] sm:$0xff]  ;;  %v2757_v10 = vld [vmem:[#allocation13] sm:$0xff]  ;;  %v2759_v11 = vld [vmem:[#allocation13 + $0x8] sm:$0xff]  ;;  %s923_s23 = scalar_select %p922_p1, %s2393_s25, 1 }
  0x5f   : > { %v2761_v12 = vld [vmem:[#allocation13 + $0x10] sm:$0xff]  ;;  %v2763_v13 = vld [vmem:[#allocation13 + $0x18] sm:$0xff]  ;;  %v2778_v16 = vld [vmem:[%s3062_s10 + $0x10] sm:$0xff]  ;;  %s3137_s17 = sld [smem:[#allocation40_spill]]  ;;  %s2888_s19 = smov 0  }
  0x60   : > { %v2768_v14 = vld [vmem:[%s3062_s10] sm:$0xff]  ;;  %v2773_v15 = vld [vmem:[%s3062_s10 + $0x8] sm:$0xff]  ;;  %v2783_v17 = vld [vmem:[%s3062_s10 + $0x18] sm:$0xff]  ;;  %s3138_s28 = sld [smem:[#allocation41_spill]] }
  0x61   : > { %v2788_v18 = vld [vmem:[%s3062_s10 + $0x20] sm:$0xff]  ;;  %v2793_v19 = vld [vmem:[%s3062_s10 + $0x28] sm:$0xff]  ;;  %v2798_v20 = vld [vmem:[%s3062_s10 + $0x30] sm:$0xff]  ;;  %s3139_s21 = sld [smem:[#allocation42_spill]] }
  0x62   : > { %v2731_v2 = vld [vmem:[%s3135_s29] sm:$0xff]  ;;  %v2736_v3 = vld [vmem:[%s3135_s29 + $0x8] sm:$0xff]  ;;  %v2741_v4 = vld [vmem:[%s3135_s29 + $0x10] sm:$0xff]  ;;  %s3140_s26 = sld [smem:[#allocation43_spill]] }
  0x63   : > { %v2746_v5 = vld [vmem:[%s3135_s29 + $0x18] sm:$0xff]  ;;  %v2809_v22 = vld [vmem:[%s3063_s11] sm:$0x1]  ;;  %s3141_s27 = sld [smem:[#allocation44_spill]]  ;;  %v945_v33 = vld [vmem:[#allocation8 + $0x18] sm:$0xff] }
  0x64   : > { %v2804_v21 = vld [vmem:[%s3062_s10 + $0x38] sm:$0xff]  ;;  %v2814_v23 = vld [vmem:[%s3066_s14] sm:$0x1]  ;;  %s3142_s8 = sld [smem:[#allocation45_spill]]  ;;  %v949_v34 = vld [vmem:[#allocation10 + $0x18] sm:$0xff]  ;;  %1905 = vmatpush.msra.mxu2 %v945_v33  ;;  %1000 = vmatpush.msra.mxu0 %v945_v33 }
  0x65   : > { %v2819_v24 = vld [vmem:[%s3067_s15] sm:$0x1]  ;;  %1909 = vmatpush.msra.mxu3 %v949_v34  ;;  %v943_v37 = vld [vmem:[#allocation8 + $0x8] sm:$0xff]  ;;  %1032 = vmatpush.msra.mxu1 %v949_v34  ;;  %s3144_s7 = sld [smem:[#allocation29_spill]]  ;;  %v942_v39 = vld [vmem:[#allocation8] sm:$0xff] }
  0x66   : > { %v2824_v25 = vld [vmem:[%s3136_s1] sm:$0x1]  ;;  %s1903_s1 = sshll.u32 %s923_s23, 4  ;;  %v947_v38 = vld [vmem:[#allocation10 + $0x8] sm:$0xff]  ;;  %v946_v40 = vld [vmem:[#allocation10] sm:$0xff] }
  0x67   : > { %v2829_v26 = vld [vmem:[%s3137_s17] sm:$0x1]  ;;  %s3143_s17 = sld [smem:[#allocation28_spill]] }
  0x68   : > { %v2834_v27 = vld [vmem:[%s3138_s28] sm:$0x1] }
  0x69   : > { %v2839_v28 = vld [vmem:[%s3139_s21] sm:$0x1]  ;;  %s3145_s21 = sld [smem:[#allocation37_spill]] }
  0x6a   : > { %v2844_v29 = vld [vmem:[%s3140_s26] sm:$0x1]  ;;  %s3146_s26 = sld [smem:[#allocation38_spill]] }
  0x6b   : > { %v2849_v30 = vld [vmem:[%s3141_s27] sm:$0x1] }
  0x6c   : > { %v2854_v31 = vld [vmem:[%s3142_s8] sm:$0x1] }
  0x6d   : > { %v2858_v32 = vld [vmem:[%s818_s6] sm:$0xff]  ;;  %s926_s18 = scalar_lea.vmem %s3143_s17, %s1903_s1  ;;  %s931_s6 = scalar_lea.vmem %s3144_s7, %s1903_s1 }
  0x6e   : > { %v944_v35 = vld [vmem:[#allocation8 + $0x10] sm:$0xff]  ;;  %v934_v41 = vld [vmem:[%s926_s18 + $0x8] sm:$0xff] }
  0x6f   : > { %v948_v36 = vld [vmem:[#allocation10 + $0x10] sm:$0xff]  ;;  %1906 = vmatpush.msra.mxu2 %v944_v35  ;;  %1001 = vmatpush.msra.mxu0 %v944_v35  ;;  %v936_v42 = vld [vmem:[%s931_s6 + $0x8] sm:$0xff] }
  0x70   : > { %1910 = vmatpush.msra.mxu3 %v948_v36  ;;  %1033 = vmatpush.msra.mxu1 %v948_v36  ;;  %v933_v43 = vld [vmem:[%s926_s18] sm:$0xff] }
  0x71   : > { %1907 = vmatpush.msra.mxu2 %v943_v37  ;;  %1002 = vmatpush.msra.mxu0 %v943_v37  ;;  %v935_v44 = vld [vmem:[%s931_s6] sm:$0xff] }
  0x72   : > { %1911 = vmatpush.msra.mxu3 %v947_v38  ;;  %1034 = vmatpush.msra.mxu1 %v947_v38  ;;  %v2048_v45 = vld [vmem:[%s3145_s21] ss:$0 sm:$0xff] }
  0x73   : > { %1908 = vmatpush.msra.mxu2 %v942_v39  ;;  %1003 = vmatpush.msra.mxu0 %v942_v39  ;;  %v2049_v46 = vld [vmem:[%s3146_s26] ss:$0 sm:$0xff] }
  0x74   : > { %1912 = vmatpush.msra.mxu3 %v946_v40  ;;  %1873 = vmatmul.msk.f32.vlgmr.msra.gmra.mxu2 %vm981_vm0, %v934_v41 }
  0x75   : > { %1875 = vmatmul.msk.f32.vlgmr.msra.gmra.mxu3 %vm981_vm0, %v936_v42  ;;  %1035 = vmatpush.msra.mxu1 %v946_v40 }
  0x76   : > { %1872 = vmatmul.msk.f32.vlgmr.msra.gmra.mxu0 %vm981_vm0, %v933_v43  ;;  %1874 = vmatmul.msk.f32.vlgmr.msra.gmra.mxu1 %vm981_vm0, %v935_v44 }
  0xf3   : > { %v1005_v47 = vpop.f32.mrf.mxu0  ;;  %v1037_v48 = vpop.f32.mrf.mxu1 }
  0xf4   : > { %v2876_v49 = vadd.f32 %v2048_v45, %v1005_v47  ;;  %v2878_v50 = vadd.f32 %v2049_v46, %v1037_v48 }
  0xf7   : > { %v1008_v51 = vpop.f32.mrf.mxu2 }
  0xf8   : > { %v1040_v52 = vpop.f32.mrf.mxu3  ;;  %v2880_v53 = vadd.f32 %v2048_v45, %v1008_v51 }
  0xf9   : > { %v2882_v54 = vadd.f32 %v2049_v46, %v1040_v52 }
  0xfa LB: >> { %1070 = vmatpush.msra.mxu0 %v2746_v5  ;;  %vm1079_vm1 = vcmask 64512   ;;  %s2417_s27 = smov 120   ;;  %v1051_v55 = vadd.f32 %v2405_v0, %v2858_v32  ;;  %1265 = vmatpush.msra.mxu1 %v2748_v6  ;;  %s2418_s20 = smov 112   ;;  %v1053_v56 = vperm.slane %v2809_v22, 0  ;;  %vm1109_vm2 = vcmask 130048   ;;  %s2409_s19 = sphi %s2888_s19, %s1049_s19   ;;  %v2405_v0 = vphi %v2724_v0, %v3147_v0  }
  0xfb   : >> { %1140 = vmatpush.msra.mxu2 %v2882_v54  ;;  %1151 = vrot.lane.b32.xlu1 %v2880_v53, %s2417_s27  ;;  %s2419_s5 = smov 104   ;;  %v2055_v51 = vpack.i.bf16 %v2878_v50, %v2882_v54  ;;  %vm1540_vm7 = vcmask 523264   ;;  %s1049_s19 = sadd.s32 1, %s2409_s19  }
  0xfc   : >> { %1877 = vmatpush.xpose.msk.msra.mxu3 %vm1079_vm1, %v2880_v53  ;;  %1071 = vmatpush.msra.mxu0 %v2741_v4  ;;  %p1046_p3 = scmp.ge.s32.totalorder %s1049_s19, 2  }
  0xfd   : >> { %1141 = vmatpush.msra.mxu2 %v2878_v50  ;;  %s1900_s8 = sshll.u32 (%p1046_p3), %s2393_s25, 3  ;;  %v1625_v5 = vperm.slane (%p1046_p3), %v2849_v30, 0  ;;  %s3148_s16 = sld [smem:[#allocation46_spill]] (%p1046_p3) }
  0xfe   : >> { %1072 = vmatpush.msra.mxu0 %v2736_v3  ;;  %s1647_s4 = sshll.u32 (%p1046_p3), %s921_s2, 4  ;;  %s1634_s25 = scalar_lea.sflag (%p1046_p3), [#allocation4], %s2698_s22  ;;  %s1648_s4 = int_to_ptr.vmem [resolvable:$true] %s1647_s4 }
 0x100   : >> { %1878 = vmatpush.xpose.msk.msra.mxu3 %vm1079_vm1, %v2876_v49  ;;  %1073 = vmatpush.msra.mxu0 %v2731_v2 }
 0x101   : >> { %1876 = vmatmul.msk.f32.vlgmr.msra.gmra.mxu0 %vm981_vm0, %v1051_v55 }
 0x102   : >> { %1242 = vmatpush.msrb.mxu0 %v2750_v7 }
 0x103   : >> { %1149 = vrot.lane.b32.xlu1 %v2876_v49, %s2417_s27  ;;  %s1645_s17 = scalar_lea.hbm (%p1046_p3), %s3148_s16, %s1900_s8  ;;  %s2319_s21 = scalar_lea.hbm (%p1046_p3), %s3148_s16, 16 }
 0x104   : >> { %1363 = vmatpush.msra.mxu0 %v2752_v8  ;;  %v1629_v8 = vperm.slane (%p1046_p3), %v2854_v31, 0  ;;  %s1649_s28 = sshll.u32 (%p1046_p3), %s1645_s17, 4  ;;  %s1650_s28 = int_to_ptr.hbm [resolvable:$true] %s1649_s28 }
 0x105   : > { %s2313_s7 = sshra.s32 (%p1046_p3), %s1650_s28, 4  ;;  %s2314_s7 = int_to_ptr.hbm [resolvable:$true] %s2313_s7 }
 0x106   : > { %s2315_s6 = scalar_lea.hbm (%p1046_p3), %s2314_s7, 8  ;;  %p2320_p12 = scmp.lt.s32.totalorder (%p1046_p3), %s2314_s7, %s3148_s16 }
 0x107   : > { %p2316_p5 = scmp.ne.s32.totalorder (%p1046_p3), %s2314_s7, %s2315_s6  ;;  %p2321_p13 = scmp.lt.s32.totalorder (%p1046_p3), %s2319_s21, %s2315_s6 }
 0x109   : > { %p2317_p10 = pnand (%p1046_p3), %p2316_p5, %p2629_p2  ;;  %p2322_p0 = por (%p1046_p3), %p2321_p13, %p2320_p12 }
 0x10b   : >> { %1272 = vrot.lane.b32.xlu1 %v2876_v49, %s2418_s20  ;;  %p2318_p11 = pneg (%p1046_p3), %p2317_p10 }
 0x10d   : > { %p2323_p4 = pnand (%p1046_p3), %p2322_p0, %p2318_p11 }
 0x16d   : >> { %v1152_v57 = vpop.permute.xlu1 %1151 }
 0x16e   : >> { %1881 = vmatpush.xpose.msk.msrb.mxu3 %vm1079_vm1, %v1152_v57 }
 0x175   : >> { %v1150_v61 = vpop.permute.xlu1 %1149 }
 0x176   : >> { %1882 = vmatpush.xpose.msk.msrb.mxu3 %vm1079_vm1, %v1150_v61 }
 0x17d   : >> { %v1273_v33 = vpop.permute.xlu1 %1272 }
 0x17e   : >> { %v1075_v58 = vpop.f32.mrf.mxu0 }
 0x17f   : >> { %v1076_v59 = vadd.f32 %v1075_v58, %v1053_v56 }
 0x181   : >> { %v1078_v60 = vmul.f32 0.35355338, %v1076_v59 }
 0x183   : >> { %1270 = vrot.lane.b32.xlu1 %v1078_v60, %s2418_s20  ;;  %1147 = vrot.lane.b32.xlu2 %v1078_v60, %s2417_s27 }
 0x184   : >> { %1879 = vmatmul.msk.f32.vlgmr.msra.gmra.mxu3 %vm1079_vm1, %v1078_v60 }
 0x18b   : >> { %1274 = vrot.lane.b32.xlu2 %v2880_v53, %s2418_s20 }
 0x193   : >> { %1371 = vrot.lane.b32.xlu2 %v2876_v49, %s2419_s5 }
 0x19b   : >> { %1369 = vrot.lane.b32.xlu2 %v1078_v60, %s2419_s5 }
 0x1dd   : >> { %v1148_v62 = vpop.permute.xlu2 %1147 }
 0x1de   : >> { %1883 = vmatmul.msk.f32.vlgmr.msrb.gmra.mxu3 %vm1079_vm1, %v1148_v62 }
 0x1e5   : >> { %v1275_v63 = vpop.permute.xlu2 %1274 }
 0x1e6   : >> { %1887 = vmatpush.xpose.msk.msra.mxu3 %vm1079_vm1, %v1275_v63 }
 0x1ea   : >> { %1888 = vmatpush.xpose.msk.msra.mxu3 %vm1079_vm1, %v1273_v33 }
 0x1ed   : >> { %v1372_v60 = vpop.permute.xlu2 %1371 }
 0x1f5   : >> { %v1271_v34 = vpop.permute.xlu1 %1270  ;;  %v1370_v63 = vpop.permute.xlu2 %1369 }
 0x1f6   : >> { %1889 = vmatmul.msk.f32.vlgmr.msra.gmra.mxu3 %vm1079_vm1, %v1271_v34 }
 0x207   : >> { %v1106_v35 = vpop.f32.mrf.mxu3 }
 0x208   : >> { %v1107_v36 = vadd.f32 %v1106_v35, %v2726_v1 }
 0x20a   : >> { %v1110_v37 = vsel %vm1109_vm2, %v1107_v36, -inf }
 0x20b   : >> { %1111 = vmax.xlane.f32.xlu0 %v1110_v37 }
 0x261   : >> { %v1176_v38 = vpop.f32.mrf.mxu3 }
 0x262   : >> { %v1177_v39 = vadd.f32 %v1176_v38, %v2726_v1 }
 0x264   : >> { %v1179_v40 = vsel %vm1109_vm2, %v1177_v39, -inf }
 0x265   : >> { %1180 = vmax.xlane.f32.xlu1 %v1179_v40 }
 0x279   : >> { %v1299_v46 = vpop.f32.mrf.mxu3 }
 0x27a   : >> { %v1300_v47 = vadd.f32 %v1299_v46, %v2726_v1 }
 0x27c   : >> { %v1302_v48 = vsel %vm1109_vm2, %v1300_v47, -inf }
 0x27e   : >> { %v1112_v41 = vpop.xlane.xlu0 %1111  ;;  %2056 = vrot.lane.b32.xlu1 %v2055_v51, %s2419_s5 }
 0x27f   : >> { %v1113_v42 = vsub.f32 %v1107_v36, %v1112_v41 }
 0x281   : >> { %v1114_v43 = vmul.f32 1.442695, %v1113_v42 }
 0x283   : >> { %2065 = vpow2.f32 %v1114_v43 }
 0x289   : >> { %v2066_v44 = vpop.eup %2065 }
 0x28a   : >> { %1880 = vmatmul.msk.f32.vlgmr.msra.gmra.mxu2 %vm1109_vm2, %v2066_v44  ;;  %v1116_v45 = vsel %vm1109_vm2, %v2066_v44, 0.0 }
 0x28b   : >> { %1117 = vadd.xlane.f32.xlu0 %v1116_v45 }
 0x29f   : >> { %1373 = vrot.lane.b32.xlu0 %v2880_v53, %s2419_s5 }
 0x2c9   : >> { %1303 = vmax.xlane.f32.xlu0 %v1302_v48 }
 0x2d8   : >> { %v1181_v38 = vpop.xlane.xlu1 %1180 }
 0x2dd   : >> { %2061 = vrot.lane.b32.xlu0 %v2055_v51, %s2418_s20 }
 0x2f0   : >> { %v2057_v41 = vpop.permute.xlu1 %2056 }
 0x2f1   : >> { %v2059_v42 = vunpack.i.h.bf16 %v2057_v41  ;;  %v2058_v43 = vunpack.i.l.bf16 %v2057_v41 }
 0x2f3   : >> { %1437 = vmatpush.msrb.mxu3 %v2058_v43 }
 0x2f5   : >> { %1438 = vmatpush.msrb.mxu3 %v2059_v42 }
 0x2fe   : >> { %v1118_v52 = vpop.xlane.xlu0 %1117 }
 0x2ff   : >> { %2067 = vrcp.f32 %v1118_v52 }
 0x305   : >> { %v2068_v55 = vpop.eup %2067 }
 0x306   : >> { %v1120_v56 = vmul.f32 %v2068_v55, %v1118_v52 }
 0x308   : >> { %v1121_v57 = vsub.f32 2.0, %v1120_v56 }
 0x30a   : >> { %v1122_v58 = vmul.f32 %v2068_v55, %v1121_v57 }
 0x30d   : >> { %v1143_v59 = vpop.f32.mrf.mxu2 }
 0x30e   : >> { %v1146_v61 = vmul.f32 %v1143_v59, %v1122_v58 }
 0x310   : >> { %1886 = vmatmul.msk.f32.vlgmr.msra.gmra.mxu1 %vm1079_vm1, %v1146_v61 }
 0x311   : >> { %v1374_v62 = vpop.permute.xlu0 %1373 }
 0x312   : >> { %1892 = vmatpush.xpose.msk.msrb.mxu1 %vm1079_vm1, %v1374_v62 }
 0x316   : >> { %1893 = vmatpush.xpose.msk.msrb.mxu1 %vm1079_vm1, %v1372_v60 }
 0x319   : >> { %1894 = vmatmul.msk.f32.vlgmr.msrb.gmra.mxu1 %vm1079_vm1, %v1370_v63 }
 0x31a   : >> { %1552 = vmatpush.msra.mxu1 %v2804_v21 }
 0x31c   : >> { %1553 = vmatpush.msra.mxu1 %v2798_v20 }
 0x31e   : >> { %1554 = vmatpush.msra.mxu1 %v2793_v19 }
 0x320   : >> { %1555 = vmatpush.msra.mxu1 %v2788_v18 }
 0x322   : >> { %1556 = vmatpush.msra.mxu1 %v2783_v17 }
 0x324   : >> { %1557 = vmatpush.msra.mxu1 %v2778_v16 }
 0x326   : >> { %1558 = vmatpush.msra.mxu1 %v2773_v15 }
 0x328   : >> { %1559 = vmatpush.msra.mxu1 %v2768_v14 }
 0x33c   : >> { %v1304_v33 = vpop.xlane.xlu0 %1303 }
 0x33d   : >> { %v1305_v34 = vsub.f32 %v1300_v47, %v1304_v33  ;;  %v1182_v47 = vsub.f32 %v1177_v39, %v1181_v38 }
 0x33f   : >> { %v1306_v35 = vmul.f32 1.442695, %v1305_v34  ;;  %v1183_v48 = vmul.f32 1.442695, %v1182_v47 }
 0x341   : >> { %2069 = vpow2.f32 %v1306_v35 }
 0x342   : >> { %2071 = vpow2.f32 %v1183_v48 }
 0x347   : >> { %v2070_v36 = vpop.eup %2069 }
 0x348   : >> { %v1308_v37 = vsel %vm1109_vm2, %v2070_v36, 0.0  ;;  %v2072_v52 = vpop.eup %2071 }
 0x349   : >> { %1309 = vadd.xlane.f32.xlu1 %v1308_v37  ;;  %v1185_v55 = vsel %vm1109_vm2, %v2072_v52, 0.0 }
 0x34f   : >> { %v2062_v60 = vpop.permute.xlu0 %2061 }
 0x350   : >> { %v2063_v33 = vunpack.i.l.bf16 %v2062_v60 }
 0x38d   : >> { %v2960_v40 = vpop.f32.mrf.mxu1 }
 0x396   : >> { %v1398_v44 = vpop.f32.mrf.mxu1 }
 0x397   : >> { %v1399_v45 = vadd.f32 %v1398_v44, %v2726_v1 }
 0x399   : >> { %v1401_v46 = vsel %vm1109_vm2, %v1399_v45, -inf }
 0x39a   : >> { %1402 = vmax.xlane.f32.xlu2 %v1401_v46 }
 0x3b2   : >> { %2051 = vrot.lane.b32.xlu2 %v2055_v51, %s2417_s27  ;;  %v2064_v51 = vunpack.i.h.bf16 %v2062_v60 }
 0x3bc   : >> { %v1310_v37 = vpop.xlane.xlu1 %1309 }
 0x3db   : >> { %1186 = vadd.xlane.f32.xlu2 %v1185_v55 }
 0x40d   : >> { %v1403_v56 = vpop.xlane.xlu2 %1402 }
 0x40e   : >> { %v1404_v57 = vsub.f32 %v1399_v45, %v1403_v56 }
 0x410   : >> { %v1405_v58 = vmul.f32 1.442695, %v1404_v57 }
 0x412   : >> { %2073 = vpow2.f32 %v1405_v58 }
 0x415   : >> { %v2052_v59 = vpop.permute.xlu2 %2051 }
 0x416   : >> { %v2053_v61 = vunpack.i.l.bf16 %v2052_v59  ;;  %v2054_v63 = vunpack.i.h.bf16 %v2052_v59 }
 0x418   : >> { %v2074_v62 = vpop.eup %2073  ;;  %1217 = vmatpush.msrb.mxu2 %v2053_v61 }
 0x419   : >> { %1895 = vmatmul.msk.f32.vlgmr.msrb.gmra.mxu3 %vm1109_vm2, %v2074_v62  ;;  %v1407_v39 = vsel %vm1109_vm2, %v2074_v62, 0.0 }
 0x41a   : >> { %1408 = vadd.xlane.f32.xlu0 %v1407_v39  ;;  %1218 = vmatpush.msrb.mxu2 %v2054_v63 }
 0x41b   : >> { %1884 = vmatmul.msk.f32.vlgmr.msrb.gmra.mxu2 %vm1109_vm2, %v2072_v52 }
 0x41c   : >> { %1338 = vmatpush.msra.mxu2 %v2063_v33 }
 0x41e   : >> { %1339 = vmatpush.msra.mxu2 %v2064_v51  ;;  %v1469_v51 = vperm.slane %v2814_v23, 0 }
 0x420   : >> { %1462 = vmatpush.msrb.mxu2 %v2755_v9 }
 0x423   : >> { %1890 = vmatmul.msk.f32.vlgmr.msra.gmra.mxu2 %vm1109_vm2, %v2070_v36 }
 0x44e   : >> { %v1187_v34 = vpop.xlane.xlu2 %1186 }
 0x44f   : >> { %2075 = vrcp.f32 %v1187_v34 }
 0x455   : >> { %v2076_v38 = vpop.eup %2075 }
 0x456   : >> { %v1189_v42 = vmul.f32 %v2076_v38, %v1187_v34 }
 0x458   : >> { %v1190_v45 = vsub.f32 2.0, %v1189_v42  ;;  %v2420_v42 = vmov 32.0  }
 0x45a   : >> { %v1191_v56 = vmul.f32 %v2076_v38, %v1190_v45 }
 0x48d   : >> { %v1409_v35 = vpop.xlane.xlu0 %1408 }
 0x48e   : >> { %2077 = vrcp.f32 %v1409_v35 }
 0x48f   : >> { %2079 = vrcp.f32 %v1310_v37 }
 0x490   : >> { %2081 = vrcp.f32 %v2420_v42 }
 0x494   : >> { %v2078_v41 = vpop.eup %2077 }
 0x495   : >> { %v1411_v43 = vmul.f32 %v2078_v41, %v1409_v35  ;;  %v2080_v46 = vpop.eup %2079 }
 0x496   : >> { %v1312_v52 = vmul.f32 %v2080_v46, %v1310_v37 }
 0x497   : >> { %v1412_v44 = vsub.f32 2.0, %v1411_v43  ;;  %v2082_v43 = vpop.eup %2081 }
 0x498   : >> { %v1313_v58 = vsub.f32 2.0, %v1312_v52  ;;  %vm1481_vm3 = vweird.f32 %v2082_v43 }
 0x499   : >> { %v1413_v47 = vmul.f32 %v2078_v41, %v1412_v44  ;;  %v1477_v44 = vmul.f32 32.0, %v2082_v43 }
 0x49a   : >> { %v1314_v59 = vmul.f32 %v2080_v46, %v1313_v58 }
 0x49b   : >> { %v1478_v45 = vsub.f32 1.0, %v1477_v44 }
 0x49c   : >> { %v1440_v48 = vpop.f32.mrf.mxu3 }
 0x49d   : >> { %v1443_v55 = vmul.f32 %v1440_v48, %v1413_v47  ;;  %v1479_v46 = vmul.f32 %v2082_v43, %v1478_v45  ;;  %v1538_v45 = vperm.slane %v2824_v25, 0 }
 0x49e   : >> { %v1220_v57 = vpop.f32.mrf.mxu2 }
 0x49f   : >> { %v1223_v36 = vmul.f32 %v1220_v57, %v1191_v56  ;;  %1896 = vmatmul.msk.f32.vlgmr.msrb.gmra.mxu2 %vm1079_vm1, %v1443_v55  ;;  %v1480_v47 = vadd.f32 %v2082_v43, %v1479_v46 }
 0x4a1   : >> { %1885 = vmatmul.msk.f32.vlgmr.msrb.gmra.mxu0 %vm1079_vm1, %v1223_v36 }
 0x4a2   : >> { %1528 = vmatpush.msrb.mxu0 %v2763_v13 }
 0x4a4   : >> { %1529 = vmatpush.msrb.mxu0 %v2761_v12 }
 0x4a6   : >> { %v1341_v60 = vpop.f32.mrf.mxu2  ;;  %1530 = vmatpush.msrb.mxu0 %v2759_v11 }
 0x4a7   : >> { %v1344_v61 = vmul.f32 %v1341_v60, %v1314_v59 }
 0x4a8   : >> { %1531 = vmatpush.msrb.mxu0 %v2757_v10 }
 0x4a9   : >> { %1891 = vmatmul.msk.f32.vlgmr.msra.gmra.mxu0 %vm1079_vm1, %v1344_v61 }
 0x51e   : >> { %v1244_v62 = vpop.f32.mrf.mxu0 }
 0x51f   : >> { %v1268_v63 = vadd.f32 %v2960_v40, %v1244_v62  ;;  %v2982_v40 = vsel %vm1481_vm3, %v2082_v43, %v1480_v47 }
 0x522   : >> { %v1464_v34 = vpop.f32.mrf.mxu2 }
 0x526   : >> { %v1365_v33 = vpop.f32.mrf.mxu0 }
 0x527   : >> { %v1368_v39 = vadd.f32 %v1365_v33, %v1268_v63 }
 0x529   : >> { %v1467_v35 = vadd.f32 %v1464_v34, %v1368_v39  ;;  %v1503_v39 = vperm.slane %v2829_v26, 0 }
 0x52b   : >> { %v1471_v37 = vadd.f32 %v1469_v51, %v1467_v35  ;;  %v1507_v35 = vperm.slane %v2834_v27, 0 }
 0x52d   : >> { %v1472_v38 = vadd.f32 %v2405_v0, %v1471_v37 }
 0x52f   : >> { %v1473_v41 = vsel %vm981_vm0, %v1472_v38, 0.0 }
 0x530   : >> { %1474 = vadd.xlane.f32.xlu2 %v1473_v41  ;;  %v1511_v41 = vperm.slane %v2819_v24, 0 }
 0x5a3   : >> { %v1475_v48 = vpop.xlane.xlu2 %1474 }
 0x5a4   : >> { %v1483_v52 = vmul.f32 %v2982_v40, %v1475_v48 }
 0x5a6   : >> { %v1484_v55 = vsub.f32 %v1472_v38, %v1483_v52 }
 0x5a8   : >> { %v1485_v56 = vmul.f32 %v1484_v55, %v1484_v55 }
 0x5aa   : >> { %v1486_v0 = vsel %vm981_vm0, %v1485_v56, 0.0 }
 0x5ab   : >> { %1487 = vadd.xlane.f32.xlu0 %v1486_v0 }
 0x61e   : >> { %v1488_v57 = vpop.xlane.xlu0 %1487 }
 0x61f   : >> { %v1489_v36 = vmul.f32 %v1488_v57, %v2982_v40 }
 0x621   : >> { %v1490_v58 = vadd.f32 1e-05, %v1489_v36 }
 0x623   : >> { %2083 = vrsqrt.f32 %v1490_v58  ;;  %vm1497_vm5 = vweird.f32 %v1490_v58 }
 0x629   : >> { %v2084_v59 = vpop.eup %2083 }
 0x62a   : >> { %v1492_v60 = vmul.f32 %v2084_v59, %v1490_v58  ;;  %vm1498_vm4 = vweird.f32 %v2084_v59 }
 0x62b   : >> { %vm1499_vm6 = vmor %vm1497_vm5, %vm1498_vm4 }
 0x62c   : >> { %v1493_v61 = vmul.f32 %v2084_v59, %v1492_v60 }
 0x62e   : >> { %v1494_v62 = vmul.f32 0.5, %v1493_v61 }
 0x630   : >> { %v1495_v63 = vsub.f32 1.5, %v1494_v62 }
 0x632   : >> { %v1496_v33 = vmul.f32 %v2084_v59, %v1495_v63 }
 0x634   : >> { %v1500_v51 = vsel %vm1499_vm6, %v2084_v59, %v1496_v33 }
 0x635   : >> { %v1501_v34 = vmul.f32 %v1500_v51, %v1484_v55 }
 0x637   : >> { %v1505_v37 = vmul.f32 %v1503_v39, %v1501_v34  ;;  %v1588_v34 = vperm.slane %v2839_v28, 0 }
 0x639   : >> { %v1509_v38 = vadd.f32 %v1507_v35, %v1505_v37  ;;  %v1592_v37 = vperm.slane %v2844_v29, 0 }
 0x63b   : >> { %1897 = vmatmul.msk.f32.vlgmr.msrb.gmra.mxu0 %vm981_vm0, %v1509_v38 }
 0x6b8   : >> { %v1533_v42 = vpop.f32.mrf.mxu0 }
 0x6b9   : >> { %v1534_v43 = vadd.f32 %v1533_v42, %v1511_v41 }
 0x6bb   : >> { %v1536_v44 = vmax.f32 %v1534_v43, 0.0 }
 0x6bd   : >> { %1898 = vmatmul.msk.f32.vlgmr.msra.gmra.mxu1 %vm1540_vm7, %v1536_v44 }
 0x73a   : >> { %v1561_v46 = vpop.f32.mrf.mxu1 }
 0x73b   : >> { %v1562_v47 = vadd.f32 %v1561_v46, %v1538_v45 }
 0x73d   : >> { %v1564_v48 = vadd.f32 %v1562_v47, %v1509_v38 }
 0x73f   : >> { %v1565_v52 = vsel %vm981_vm0, %v1564_v48, 0.0 }
 0x740   : >> { %1566 = vadd.xlane.f32.xlu1 %v1565_v52 }
 0x7b3   : >> { %v1567_v55 = vpop.xlane.xlu1 %1566 }
 0x7b4   : >> { %v1568_v56 = vmul.f32 %v1567_v55, %v2982_v40 }
 0x7b6   : >> { %v1569_v0 = vsub.f32 %v1564_v48, %v1568_v56 }
 0x7b8   : >> { %v1570_v57 = vmul.f32 %v1569_v0, %v1569_v0 }
 0x7ba   : >> { %v1571_v36 = vsel %vm981_vm0, %v1570_v57, 0.0 }
 0x7bb   : >> { %1572 = vadd.xlane.f32.xlu2 %v1571_v36 }
 0x82e   : >> { %v1573_v58 = vpop.xlane.xlu2 %1572 }
 0x82f   : >> { %v1574_v59 = vmul.f32 %v1573_v58, %v2982_v40 }
 0x831   : >> { %v1575_v60 = vadd.f32 1e-05, %v1574_v59 }
 0x833   : >> { %2085 = vrsqrt.f32 %v1575_v60  ;;  %vm1582_vm9 = vweird.f32 %v1575_v60 }
 0x839   : >> { %v2086_v61 = vpop.eup %2085 }
 0x83a   : >> { %v1577_v62 = vmul.f32 %v2086_v61, %v1575_v60  ;;  %vm1583_vm8 = vweird.f32 %v2086_v61 }
 0x83b   : >> { %vm1584_vm10 = vmor %vm1582_vm9, %vm1583_vm8 }
 0x83c   : >> { %v1578_v63 = vmul.f32 %v2086_v61, %v1577_v62 }
 0x83e   : >> { %v1579_v33 = vmul.f32 0.5, %v1578_v63 }
 0x840   : >> { %v1580_v39 = vsub.f32 1.5, %v1579_v33 }
 0x842   : >> { %v1581_v51 = vmul.f32 %v2086_v61, %v1580_v39 }
 0x844   : >> { %v1585_v35 = vsel %vm1584_vm10, %v2086_v61, %v1581_v51 }
 0x845   : >> { %v1586_v38 = vmul.f32 %v1585_v35, %v1569_v0 }
 0x847   : >> { %v1590_v41 = vmul.f32 %v1588_v34, %v1586_v38  ;;  %1048 = sbr.rel (!%p1046_p3) target bundleno = 250 (0xfa), region = 210 }
 0x849   : >> { %v1594_v42 = vadd.f32 %v1592_v37, %v1590_v41  }
 0x84b   : >> { %v3147_v0 = vmov %v1594_v42  ;;  %v1595_v43 = vsel (%p1046_p3), %vm981_vm0, %v1594_v42, 0.0 }
 0x84c   : > { %1596 = vadd.xlane.f32.xlu0 %v1595_v43 }
 0x8bf   : > { %v1597_v44 = vpop.xlane.xlu0 %1596 }
 0x8c0   : > { %v1605_v45 = vmul.f32 %v1597_v44, %v2982_v40 }
 0x8c2   : > { %v1606_v46 = vsub.f32 %v1594_v42, %v1605_v45 }
 0x8c4   : > { %v1607_v47 = vmul.f32 %v1606_v46, %v1606_v46 }
 0x8c6   : > { %v1608_v48 = vsel %vm981_vm0, %v1607_v47, 0.0 }
 0x8c7   : > { %1609 = vadd.xlane.f32.xlu0 %v1608_v48 }
 0x93a   : > { %v1610_v52 = vpop.xlane.xlu0 %1609 }
 0x93b   : > { %v1611_v55 = vmul.f32 %v1610_v52, %v2982_v40 }
 0x93d   : > { %v1612_v56 = vadd.f32 1e-05, %v1611_v55 }
 0x93f   : > { %2087 = vrsqrt.f32 %v1612_v56  ;;  %vm1619_vm12 = vweird.f32 %v1612_v56 }
 0x945   : > { %v2088_v0 = vpop.eup %2087 }
 0x946   : > { %v1614_v57 = vmul.f32 %v2088_v0, %v1612_v56  ;;  %vm1620_vm11 = vweird.f32 %v2088_v0 }
 0x947   : > { %vm1621_vm13 = vmor %vm1619_vm12, %vm1620_vm11 }
 0x948   : > { %v1615_v1 = vmul.f32 %v2088_v0, %v1614_v57 }
 0x94a   : > { %v1616_v2 = vmul.f32 0.5, %v1615_v1 }
 0x94c   : > { %v1617_v3 = vsub.f32 1.5, %v1616_v2 }
 0x94e   : > { %v1618_v4 = vmul.f32 %v2088_v0, %v1617_v3 }
 0x950   : > { %v1622_v6 = vsel %vm1621_vm13, %v2088_v0, %v1618_v4 }
 0x951   : > { %v1623_v7 = vmul.f32 %v1622_v6, %v1606_v46 }
 0x953   : > { %v1627_v9 = vmul.f32 %v1625_v5, %v1623_v7 }
 0x955   : > { %v1631_v10 = vadd.f32 %v1629_v8, %v1627_v9 }
 0x957   : > { %1632 = vst.msk [vmem:[%s921_s2] sm:$0xff] %vm981_vm0, %v1631_v10 }
 0x958   : > { %2326 = shalt.err (!%p2323_p4)
}
 0x959   : > { %1935 = dma.vmem_to_hbm [thread:$0]  (%p2629_p2), %s1648_s4, 128, %s1650_s28, %s1634_s25  }
 0x95a PF: > { %s3150_s22 = sld [smem:[#allocation20_spill]]  ;;  %p1961_p9 = pnand %p1852_p6, %p2636_p7 }
 0x95b   : > { %s3152_s26 = sld [smem:[#allocation22_spill]] }
 0x95c   : > { %p1962_p8 = pneg %p1961_p9 }
 0x960   : > { %s1661_s2 = sand.u32 1, %s3150_s22  }
 0x961   : > { %s1662_s19 = scalar_lea.sflag [#allocation4], %s1661_s2 }
 0x962   : > { %2376 = dma.done.wait (%p1962_p8), %s1662_s19, 128  }
 0x963   : > { %2378 = vsyncadd (%p1962_p8), %s1662_s19, 4294967168  ;;  %s44_s1 = sadd.s32 1, %s3152_s26   ;;  %s3153_s27 = sld [smem:[#allocation25_spill]] }
 0x964   : > { %p41_p1 = scmp.ge.s32.totalorder %s44_s1, 4   ;;  %s3154_s25 = sld [smem:[#allocation21_spill]] }
 0x965   : > { %s3155_s5 = sld [smem:[#allocation23_spill]]  ;;  %s3156_s4 = smov %s2385_s30 }
 0x966   : > { %s3157_s30 = smov %s2389_s24  ;;  %43 = sbr.rel (!%p41_p1) target bundleno = 31 (0x1f), region = 221 }
 0x969   : > { %s3158_s24 = smov %s3153_s27 }
 0x96b   :  { %1668 = vsyncpa [#allocation3], 1 }
 0x96c   :  { %1670 = vsyncpa [#allocation3 + $0x1], 1 }
 0x96d   :  { %1671 = vsyncpa [#allocation6], 1 }
 0x96e   :  { %1673 = vsyncpa [#allocation6 + $0x1], 1 }
 0x96f   :  { %1674 = vsyncpa [#allocation9], 1 }
 0x970   :  { %1675 = vsyncpa [#allocation12], 1 }
 0x971   :  { %1676 = vsyncpa [#allocation4], 1 }
 0x972   :  { %1678 = vsyncpa [#allocation4 + $0x1], 1 }

</bundles_post_ra>
